<compile_context>
chip_gen: v5e
topology: v5e:2x2
jax: 0.10.0
libtpu: 0.0.40
codegen_flags: <defaults>
</compile_context>

<pallas_src>
import functools

import jax
import jax.numpy as jnp
from jax.experimental import pallas as pl
from jax.experimental.pallas import tpu as pltpu


# ----------------------------- kernel 1: fused QKV projection -----------------------------
def qkv_proj_kernel(x_ref, w_ref, qkv_ref):
    # x_ref: (1, tp, d_in) bf16, w_ref: (d_in, 3*d_out) bf16 (W_q pre-scaled by 1/sqrt(hd)).
    qkv_ref[0] = jnp.dot(
        x_ref[0], w_ref[...], preferred_element_type=jnp.float32
    ).astype(qkv_ref.dtype)


# ------------------- kernel 2: kv-tiled flash attention + fused out_proj ------------------
def flash_attn_kernel(q_ref, k_ref, v_ref, wo_ref, bo_ref, o_ref,
                      m_ref, l_ref, acc_ref, ctx_ref):
    H, q_block, hd = q_ref.shape[1], q_ref.shape[2], q_ref.shape[3]
    kv_block = k_ref.shape[2]

    ki = pl.program_id(2)
    q_start = pl.program_id(1) * q_block
    kv_start = ki * kv_block

    @pl.when(ki == 0)
    def _init():
        m_ref[...] = jnp.full(m_ref.shape, -1e30, dtype=m_ref.dtype)
        l_ref[...] = jnp.zeros(l_ref.shape, dtype=l_ref.dtype)
        acc_ref[...] = jnp.zeros(acc_ref.shape, dtype=acc_ref.dtype)

    # Causal block skip: a kv block contributes only if it contains any column
    # index <= the last query row of this tile.
    @pl.when(kv_start < q_start + q_block)
    def _accumulate():
        q = q_ref[0]                                   # (H, tq, hd) bf16, pre-scaled
        k = k_ref[0]                                   # (H, tk, hd) bf16
        v = v_ref[0]                                   # (H, tk, hd) bf16

        s = jax.lax.dot_general(                       # 'hqd,hkd->hqk'
            q, k, (((2,), (2,)), ((0,), (0,))),
            preferred_element_type=jnp.float32)        # (H, tq, tk) f32

        rows = q_start + jax.lax.broadcasted_iota(jnp.int32, (q_block, kv_block), 0)
        cols = kv_start + jax.lax.broadcasted_iota(jnp.int32, (q_block, kv_block), 1)
        bias = jnp.where(cols > rows, -1e30, 0.0).astype(jnp.float32)
        s = s + bias                                   # broadcast over heads

        m_prev = m_ref[...]                            # (H, tq, 1)
        m_new = jnp.maximum(m_prev, jnp.max(s, axis=-1, keepdims=True))
        alpha = jnp.exp(m_prev - m_new)
        p = jnp.exp(s - m_new)                         # (H, tq, tk) f32
        # TODO(synk): training-mode dropout on `p` (attention weights) would go here.
        l_ref[...] = alpha * l_ref[...] + jnp.sum(p, axis=-1, keepdims=True)
        acc_ref[...] = alpha * acc_ref[...] + jax.lax.dot_general(  # 'hqk,hkd->hqd'
            p.astype(v.dtype), v, (((2,), (1,)), ((0,), (0,))),
            preferred_element_type=jnp.float32)        # (H, tq, hd) f32
        m_ref[...] = m_new

    @pl.when(ki == pl.num_programs(2) - 1)
    def _finalize():
        inv_l = pl.reciprocal(l_ref[...], approx=True)           # EUP reciprocal
        ctx = (acc_ref[...] * inv_l).astype(ctx_ref.dtype)       # (H, tq, hd) bf16
        # Merge heads into (tq, H*hd) via static lane-sliced stores (cheap, no
        # vector reshape/transpose), then ONE K=d_out MXU matmul fuses the
        # head-concat + output projection.
        for h in range(H):                                       # static unroll, small H
            ctx_ref[:, h * hd:(h + 1) * hd] = ctx[h]
        out = jnp.dot(ctx_ref[...], wo_ref[...],
                      preferred_element_type=jnp.float32) + bo_ref[...]
        o_ref[0] = out.astype(o_ref.dtype)


# ----------------------------------------- wrapper ----------------------------------------
def _pick_block(total: int, preferred: int) -> int:
    """Largest multiple of 16 (bf16 sublane tile) <= preferred that divides total, else total."""
    if total <= preferred:
        return total
    preferred = max(16, (preferred // 16) * 16)
    for blk in range(preferred, 15, -16):
        if total % blk == 0:
            return blk
    return total


def _vmem_limit(block_bytes: int, scratch_bytes: int = 0) -> int:
    # double-buffered blocks + scratch + headroom, capped below v7x's 64 MiB physical VMEM.
    need = 2 * block_bytes + scratch_bytes + (8 << 20)
    return int(min(56 << 20, max(32 << 20, need)))


@functools.partial(jax.jit,
                   static_argnames=("num_heads", "q_block_size", "kv_block_size"))
def multi_head_attention(x, wq, wk, wv, wo, bo, *, num_heads: int,
                         q_block_size: int = 128, kv_block_size: int = 128):
    # Weights are taken in (d_in, d_out) layout: the kernel computes x @ W,
    # identical semantics to nn.Linear's x @ W.T with its (d_out, d_in) storage.
    B, T, d_in = x.shape
    d_out = wq.shape[1]
    assert d_out % num_heads == 0, "d_out must be divisible by num_heads"
    H = num_heads
    hd = d_out // num_heads
    out_dtype = x.dtype

    q_block = _pick_block(T, q_block_size)      # raise q_block_size to 256 on v6e
    kv_block = _pick_block(T, kv_block_size)
    proj_block = _pick_block(T, 256)

    # Host-side (one-time) layout prep: bf16 activations, fused + pre-scaled weights.
    x_bf = x.astype(jnp.bfloat16)
    scale = 1.0 / (hd ** 0.5)
    w_qkv = jnp.concatenate(
        [jnp.asarray(wq, jnp.float32) * scale,          # fold 1/sqrt(hd) into W_q
         jnp.asarray(wk, jnp.float32),
         jnp.asarray(wv, jnp.float32)], axis=1).astype(jnp.bfloat16)   # (d_in, 3*d_out)
    wo_bf = jnp.asarray(wo, jnp.bfloat16)                              # (d_out, d_out)
    bo2 = jnp.asarray(bo, jnp.float32).reshape(1, d_out)

    # ---- pass 1: QKV projection, computed once (hoisted out of the attention grid) ----
    proj_block_bytes = 2 * (proj_block * d_in + d_in * 3 * d_out + proj_block * 3 * d_out)
    qkv = pl.pallas_call(
        qkv_proj_kernel,
        out_shape=jax.ShapeDtypeStruct((B, T, 3 * d_out), jnp.bfloat16),
        grid_spec=pltpu.PrefetchScalarGridSpec(
            num_scalar_prefetch=0,
            grid=(B, T // proj_block),
            in_specs=[
                pl.BlockSpec((1, proj_block, d_in), lambda b, i: (b, i, 0)),
                pl.BlockSpec((d_in, 3 * d_out), lambda b, i: (0, 0)),
            ],
            out_specs=pl.BlockSpec((1, proj_block, 3 * d_out), lambda b, i: (b, i, 0)),
        ),
        compiler_params=pltpu.CompilerParams(
            dimension_semantics=("parallel", "parallel"),
            vmem_limit_bytes=_vmem_limit(proj_block_bytes),
        ),
    )(x_bf, w_qkv)

    # Head split is pure layout plumbing between the two pallas_calls; leave it to XLA.
    q, k, v = jnp.split(qkv, 3, axis=-1)
    def heads(t):
        return t.reshape(B, T, H, hd).transpose(0, 2, 1, 3)            # (B, H, T, hd)
    q_h, k_h, v_h = heads(q), heads(k), heads(v)

    # ---- pass 2: kv-tiled online-softmax attention + fused output projection ----
    num_q, num_kv = T // q_block, T // kv_block
    attn_block_bytes = (2 * (H * q_block * hd + 2 * H * kv_block * hd + d_out * d_out)
                        + 4 * d_out
                        + q_block * d_out * jnp.dtype(out_dtype).itemsize)
    attn_scratch_bytes = 4 * (2 * H * q_block + H * q_block * hd) + 2 * q_block * d_out

    out = pl.pallas_call(
        flash_attn_kernel,
        out_shape=jax.ShapeDtypeStruct((B, T, d_out), out_dtype),
        grid_spec=pltpu.PrefetchScalarGridSpec(
            num_scalar_prefetch=0,
            grid=(B, num_q, num_kv),
            in_specs=[
                pl.BlockSpec((1, H, q_block, hd), lambda b, qi, ki: (b, 0, qi, 0)),
                pl.BlockSpec((1, H, kv_block, hd), lambda b, qi, ki: (b, 0, ki, 0)),
                pl.BlockSpec((1, H, kv_block, hd), lambda b, qi, ki: (b, 0, ki, 0)),
                pl.BlockSpec((d_out, d_out), lambda b, qi, ki: (0, 0)),
                pl.BlockSpec((1, d_out), lambda b, qi, ki: (0, 0)),
            ],
            out_specs=pl.BlockSpec((1, q_block, d_out), lambda b, qi, ki: (b, qi, 0)),
            scratch_shapes=[
                pltpu.VMEM((H, q_block, 1), jnp.float32),     # running max  m
                pltpu.VMEM((H, q_block, 1), jnp.float32),     # running sum  l
                pltpu.VMEM((H, q_block, hd), jnp.float32),    # running PV accumulator
                pltpu.VMEM((q_block, d_out), jnp.bfloat16),   # merged-heads context tile
            ],
        ),
        compiler_params=pltpu.CompilerParams(
            dimension_semantics=("parallel", "parallel", "arbitrary"),
            vmem_limit_bytes=_vmem_limit(attn_block_bytes, attn_scratch_bytes),
        ),
    )(q_h, k_h, v_h, wo_bf, bo2)
    return out


# ---------------------------------------- reference ---------------------------------------
def reference(x, wq, wk, wv, wo, bo, *, num_heads: int):
    """Pure-JAX f32 reference mirroring the PyTorch forward (eval-mode dropout)."""
    B, T, d_in = x.shape
    d_out = wq.shape[1]
    hd = d_out // num_heads
    q = (x @ wq).reshape(B, T, num_heads, hd).transpose(0, 2, 1, 3)
    k = (x @ wk).reshape(B, T, num_heads, hd).transpose(0, 2, 1, 3)
    v = (x @ wv).reshape(B, T, num_heads, hd).transpose(0, 2, 1, 3)
    s = jnp.einsum("bhqd,bhkd->bhqk", q, k)
    mask = jnp.triu(jnp.ones((T, T), dtype=bool), k=1)
    s = jnp.where(mask, -jnp.inf, s)
    w = jax.nn.softmax(s / (hd ** 0.5), axis=-1)
    ctx = jnp.einsum("bhqk,bhkd->bhqd", w, v).transpose(0, 2, 1, 3).reshape(B, T, d_out)
    return ctx @ wo + bo


if __name__ == "__main__":
    # Small shapes consistent with the module's forward.
    B, T = 2, 32         # batch, num_tokens (== context_length)
    D_IN, D_OUT = 32, 32
    NUM_HEADS = 4        # head_dim = 8
    # dropout = 0.0 (eval mode) -> identity

    key = jax.random.PRNGKey(0)
    kx, kq, kk, kv, ko, kb = jax.random.split(key, 6)

    x  = jax.random.normal(kx, (B, T, D_IN), dtype=jnp.float32)
    wq = jax.random.normal(kq, (D_IN, D_OUT), dtype=jnp.float32) * 0.1
    wk = jax.random.normal(kk, (D_IN, D_OUT), dtype=jnp.float32) * 0.1
    wv = jax.random.normal(kv, (D_IN, D_OUT), dtype=jnp.float32) * 0.1
    wo = jax.random.normal(ko, (D_OUT, D_OUT), dtype=jnp.float32) * 0.1
    bo = jax.random.normal(kb, (D_OUT,), dtype=jnp.float32) * 0.1

    # block sizes 16 exercise the q-tiled + kv-tiled online-softmax path with
    # causal block skipping: grid = (2 batches, 2 q-tiles, 2 kv-tiles).
    out = multi_head_attention(x, wq, wk, wv, wo, bo, num_heads=NUM_HEADS,
                               q_block_size=16, kv_block_size=16)
    out = jax.block_until_ready(out)

    ref = reference(x, wq, wk, wv, wo, bo, num_heads=NUM_HEADS)
    assert out.shape == (B, T, D_OUT)
    max_err = jnp.max(jnp.abs(out - ref))
    # bf16 MXU inputs (f32 accumulation) + approx reciprocal -> loosened tolerance.
    assert jnp.allclose(out, ref, atol=2e-2, rtol=2e-2), \
        f"mismatch vs reference (max abs err {max_err})"

    print("KERNEL_OK")
</pallas_src>

<mosaic_0001>
module attributes {stable_mosaic.version = 11 : i64} {
  func.func @flash_attn_kernel(%arg0: i32, %arg1: i32, %arg2: i32, %arg3: memref<1x4x16x8xbf16, #tpu.memory_space<vmem>>, %arg4: memref<1x4x16x8xbf16, #tpu.memory_space<vmem>>, %arg5: memref<1x4x16x8xbf16, #tpu.memory_space<vmem>>, %arg6: memref<32x32xbf16, #tpu.memory_space<vmem>>, %arg7: memref<1x32xf32, #tpu.memory_space<vmem>>, %arg8: memref<1x16x32xf32, #tpu.memory_space<vmem>>, %arg9: memref<4x16x1xf32, #tpu.memory_space<vmem>>, %arg10: memref<4x16x1xf32, #tpu.memory_space<vmem>>, %arg11: memref<4x16x8xf32, #tpu.memory_space<vmem>>, %arg12: memref<16x32xbf16, #tpu.memory_space<vmem>>) attributes {dimension_semantics = [#tpu.dimension_semantics<parallel>, #tpu.dimension_semantics<parallel>, #tpu.dimension_semantics<arbitrary>], iteration_bounds = array<i64: 2, 2, 2>, scalar_prefetch = 0 : i64, scratch_operands = 4 : i64, tpu.core_type = #tpu.core_type<tc>, window_params = [{transform_indices = @transform_0, window_bounds = array<i64: 1, 4, 16, 8>}, {transform_indices = @transform_1, window_bounds = array<i64: 1, 4, 16, 8>}, {transform_indices = @transform_2, window_bounds = array<i64: 1, 4, 16, 8>}, {pipeline_mode = #tpu.pipeline_mode<synchronous>, transform_indices = @transform_3, window_bounds = array<i64: 32, 32>}, {pipeline_mode = #tpu.pipeline_mode<synchronous>, transform_indices = @transform_4, window_bounds = array<i64: 1, 32>}, {transform_indices = @transform_5, window_bounds = array<i64: 1, 16, 32>}]} {
    %c16_i32 = arith.constant 16 : i32
    %0 = arith.muli %arg1, %c16_i32 : i32
    %c16_i32_0 = arith.constant 16 : i32
    %1 = arith.muli %arg2, %c16_i32_0 : i32
    %c0_i32 = arith.constant 0 : i32
    %2 = arith.cmpi eq, %arg2, %c0_i32 : i32
    %3 = arith.extui %2 : i1 to i32
    %c0_i32_1 = arith.constant 0 : i32
    %4 = arith.cmpi ne, %3, %c0_i32_1 : i32
    scf.if %4 {
      %cst = arith.constant -1.000000e+30 : f32
      %12 = vector.broadcast %cst : f32 to vector<4x16x1xf32>
      %c0 = arith.constant 0 : index
      %c0_5 = arith.constant 0 : index
      %c0_6 = arith.constant 0 : index
      %13 = vector.load %arg9[%c0, %c0_5, %c0_6] : memref<4x16x1xf32, #tpu.memory_space<vmem>>, vector<4x16x1xf32>
      tpu.vector_store %arg9[%c0, %c0_5, %c0_6], %12 {strides = array<i32>} : memref<4x16x1xf32, #tpu.memory_space<vmem>>, vector<4x16x1xf32>,
      %cst_7 = arith.constant 0.000000e+00 : f32
      %14 = vector.broadcast %cst_7 : f32 to vector<4x16x1xf32>
      %c0_8 = arith.constant 0 : index
      %c0_9 = arith.constant 0 : index
      %c0_10 = arith.constant 0 : index
      %15 = vector.load %arg10[%c0_8, %c0_9, %c0_10] : memref<4x16x1xf32, #tpu.memory_space<vmem>>, vector<4x16x1xf32>
      tpu.vector_store %arg10[%c0_8, %c0_9, %c0_10], %14 {strides = array<i32>} : memref<4x16x1xf32, #tpu.memory_space<vmem>>, vector<4x16x1xf32>,
      %cst_11 = arith.constant 0.000000e+00 : f32
      %16 = vector.broadcast %cst_11 : f32 to vector<4x16x8xf32>
      %c0_12 = arith.constant 0 : index
      %c0_13 = arith.constant 0 : index
      %c0_14 = arith.constant 0 : index
      %17 = vector.load %arg11[%c0_12, %c0_13, %c0_14] : memref<4x16x8xf32, #tpu.memory_space<vmem>>, vector<4x16x8xf32>
      tpu.vector_store %arg11[%c0_12, %c0_13, %c0_14], %16 {strides = array<i32>} : memref<4x16x8xf32, #tpu.memory_space<vmem>>, vector<4x16x8xf32>,
    } else {
    }
    %c16_i32_2 = arith.constant 16 : i32
    %5 = arith.addi %0, %c16_i32_2 : i32
    %6 = arith.cmpi slt, %1, %5 : i32
    %7 = arith.extui %6 : i1 to i32
    %c0_i32_3 = arith.constant 0 : i32
    %8 = arith.cmpi ne, %7, %c0_i32_3 : i32
    scf.if %8 {
      %c0 = arith.constant 0 : index
      %c0_5 = arith.constant 0 : index
      %c0_6 = arith.constant 0 : index
      %c0_7 = arith.constant 0 : index
      %12 = vector.load %arg3[%c0, %c0_5, %c0_6, %c0_7] : memref<1x4x16x8xbf16, #tpu.memory_space<vmem>>, vector<1x4x16x8xbf16>
      %13 = vector.shape_cast %12 : vector<1x4x16x8xbf16> to vector<4x16x8xbf16>
      %c0_8 = arith.constant 0 : index
      %c0_9 = arith.constant 0 : index
      %c0_10 = arith.constant 0 : index
      %c0_11 = arith.constant 0 : index
      %14 = vector.load %arg4[%c0_8, %c0_9, %c0_10, %c0_11] : memref<1x4x16x8xbf16, #tpu.memory_space<vmem>>, vector<1x4x16x8xbf16>
      %15 = vector.shape_cast %14 : vector<1x4x16x8xbf16> to vector<4x16x8xbf16>
      %c0_12 = arith.constant 0 : index
      %c0_13 = arith.constant 0 : index
      %c0_14 = arith.constant 0 : index
      %c0_15 = arith.constant 0 : index
      %16 = vector.load %arg5[%c0_12, %c0_13, %c0_14, %c0_15] : memref<1x4x16x8xbf16, #tpu.memory_space<vmem>>, vector<1x4x16x8xbf16>
      %17 = vector.shape_cast %16 : vector<1x4x16x8xbf16> to vector<4x16x8xbf16>
      %cst = arith.constant dense<0.000000e+00> : vector<4x16x16xf32>
      %18 = tpu.matmul %13, %15, %cst {dimension_numbers = #tpu.dot_dimension_numbers<[2], [2], [1], [1], [0, 0, 0, 1, 1, 1], [0], [0]>} : vector<4x16x8xbf16>, vector<4x16x8xbf16>, vector<4x16x16xf32> -> vector<4x16x16xf32>
      %19 = tpu.iota {dimensions = array<i32: 0>} : vector<16x16xi32>
      %20 = vector.broadcast %0 : i32 to vector<16x16xi32>
      %21 = arith.addi %20, %19 : vector<16x16xi32>
      %22 = tpu.iota {dimensions = array<i32: 1>} : vector<16x16xi32>
      %23 = vector.broadcast %1 : i32 to vector<16x16xi32>
      %24 = arith.addi %23, %22 : vector<16x16xi32>
      %25 = arith.cmpi sgt, %24, %21 : vector<16x16xi32>
      %cst_16 = arith.constant -1.000000e+30 : f32
      %cst_17 = arith.constant 0.000000e+00 : f32
      %26 = vector.broadcast %cst_16 : f32 to vector<16x16xf32>
      %27 = vector.broadcast %cst_17 : f32 to vector<16x16xf32>
      %28 = arith.select %25, %26, %27 : vector<16x16xi1>, vector<16x16xf32>
      %29 = vector.shape_cast %28 : vector<16x16xf32> to vector<1x16x16xf32>
      %30 = vector.broadcast %29 : vector<1x16x16xf32> to vector<4x16x16xf32>
      %31 = arith.addf %18, %30 : vector<4x16x16xf32>
      %c0_18 = arith.constant 0 : index
      %c0_19 = arith.constant 0 : index
      %c0_20 = arith.constant 0 : index
      %32 = vector.load %arg9[%c0_18, %c0_19, %c0_20] : memref<4x16x1xf32, #tpu.memory_space<vmem>>, vector<4x16x1xf32>
      %cst_21 = arith.constant dense<0xFF800000> : vector<4x16xf32>
      %33 = vector.multi_reduction <maximumf>, %31, %cst_21 [2] : vector<4x16x16xf32> to vector<4x16xf32>
      %34 = vector.shape_cast %33 : vector<4x16xf32> to vector<4x16x1xf32>
      %35 = arith.maximumf %32, %34 : vector<4x16x1xf32>
      %36 = arith.subf %32, %35 : vector<4x16x1xf32>
      %37 = math.exp %36 : vector<4x16x1xf32>
      %38 = vector.broadcast %35 : vector<4x16x1xf32> to vector<4x16x16xf32>
      %39 = arith.subf %31, %38 : vector<4x16x16xf32>
      %40 = math.exp %39 : vector<4x16x16xf32>
      %c0_22 = arith.constant 0 : index
      %c0_23 = arith.constant 0 : index
      %c0_24 = arith.constant 0 : index
      %41 = vector.load %arg10[%c0_22, %c0_23, %c0_24] : memref<4x16x1xf32, #tpu.memory_space<vmem>>, vector<4x16x1xf32>
      %42 = arith.mulf %37, %41 : vector<4x16x1xf32>
      %cst_25 = arith.constant dense<0.000000e+00> : vector<4x16xf32>
      %43 = vector.multi_reduction <add>, %40, %cst_25 [2] : vector<4x16x16xf32> to vector<4x16xf32>
      %44 = vector.shape_cast %43 : vector<4x16xf32> to vector<4x16x1xf32>
      %45 = arith.addf %42, %44 : vector<4x16x1xf32>
      %c0_26 = arith.constant 0 : index
      %c0_27 = arith.constant 0 : index
      %c0_28 = arith.constant 0 : index
      %46 = vector.load %arg10[%c0_26, %c0_27, %c0_28] : memref<4x16x1xf32, #tpu.memory_space<vmem>>, vector<4x16x1xf32>
      tpu.vector_store %arg10[%c0_26, %c0_27, %c0_28], %45 {strides = array<i32>} : memref<4x16x1xf32, #tpu.memory_space<vmem>>, vector<4x16x1xf32>,
      %c0_29 = arith.constant 0 : index
      %c0_30 = arith.constant 0 : index
      %c0_31 = arith.constant 0 : index
      %47 = vector.load %arg11[%c0_29, %c0_30, %c0_31] : memref<4x16x8xf32, #tpu.memory_space<vmem>>, vector<4x16x8xf32>
      %48 = vector.broadcast %37 : vector<4x16x1xf32> to vector<4x16x8xf32>
      %49 = arith.mulf %48, %47 : vector<4x16x8xf32>
      %50 = arith.truncf %40 : vector<4x16x16xf32> to vector<4x16x16xbf16>
      %cst_32 = arith.constant dense<0.000000e+00> : vector<4x16x8xf32>
      %51 = tpu.matmul %50, %17, %cst_32 {dimension_numbers = #tpu.dot_dimension_numbers<[2], [1], [1], [2], [0, 0, 0, 1, 1, 2], [0], [0]>} : vector<4x16x16xbf16>, vector<4x16x8xbf16>, vector<4x16x8xf32> -> vector<4x16x8xf32>
      %52 = arith.addf %49, %51 : vector<4x16x8xf32>
      %c0_33 = arith.constant 0 : index
      %c0_34 = arith.constant 0 : index
      %c0_35 = arith.constant 0 : index
      %53 = vector.load %arg11[%c0_33, %c0_34, %c0_35] : memref<4x16x8xf32, #tpu.memory_space<vmem>>, vector<4x16x8xf32>
      tpu.vector_store %arg11[%c0_33, %c0_34, %c0_35], %52 {strides = array<i32>} : memref<4x16x8xf32, #tpu.memory_space<vmem>>, vector<4x16x8xf32>,
      %c0_36 = arith.constant 0 : index
      %c0_37 = arith.constant 0 : index
      %c0_38 = arith.constant 0 : index
      %54 = vector.load %arg9[%c0_36, %c0_37, %c0_38] : memref<4x16x1xf32, #tpu.memory_space<vmem>>, vector<4x16x1xf32>
      tpu.vector_store %arg9[%c0_36, %c0_37, %c0_38], %35 {strides = array<i32>} : memref<4x16x1xf32, #tpu.memory_space<vmem>>, vector<4x16x1xf32>,
    } else {
    }
    %c1_i32 = arith.constant 1 : i32
    %9 = arith.cmpi eq, %arg2, %c1_i32 : i32
    %10 = arith.extui %9 : i1 to i32
    %c0_i32_4 = arith.constant 0 : i32
    %11 = arith.cmpi ne, %10, %c0_i32_4 : i32
    scf.if %11 {
      %c0 = arith.constant 0 : index
      %c0_5 = arith.constant 0 : index
      %c0_6 = arith.constant 0 : index
      %12 = vector.load %arg10[%c0, %c0_5, %c0_6] : memref<4x16x1xf32, #tpu.memory_space<vmem>>, vector<4x16x1xf32>
      %13 = tpu.reciprocal %12 {approx = true} : vector<4x16x1xf32> -> vector<4x16x1xf32>
      %c0_7 = arith.constant 0 : index
      %c0_8 = arith.constant 0 : index
      %c0_9 = arith.constant 0 : index
      %14 = vector.load %arg11[%c0_7, %c0_8, %c0_9] : memref<4x16x8xf32, #tpu.memory_space<vmem>>, vector<4x16x8xf32>
      %15 = vector.broadcast %13 : vector<4x16x1xf32> to vector<4x16x8xf32>
      %16 = arith.mulf %14, %15 : vector<4x16x8xf32>
      %17 = arith.truncf %16 : vector<4x16x8xf32> to vector<4x16x8xbf16>
      %18 = vector.extract_strided_slice %17 {offsets = [0, 0, 0], sizes = [1, 16, 8], strides = [1, 1, 1]} : vector<4x16x8xbf16> to vector<1x16x8xbf16>
      %19 = vector.shape_cast %18 : vector<1x16x8xbf16> to vector<16x8xbf16>
      %c0_10 = arith.constant 0 : index
      %c0_11 = arith.constant 0 : index
      %20 = vector.load %arg12[%c0_10, %c0_11] : memref<16x32xbf16, #tpu.memory_space<vmem>>, vector<16x8xbf16>
      tpu.vector_store %arg12[%c0_10, %c0_11], %19 {strides = array<i32>} : memref<16x32xbf16, #tpu.memory_space<vmem>>, vector<16x8xbf16>,
      %21 = vector.extract_strided_slice %17 {offsets = [1, 0, 0], sizes = [1, 16, 8], strides = [1, 1, 1]} : vector<4x16x8xbf16> to vector<1x16x8xbf16>
      %22 = vector.shape_cast %21 : vector<1x16x8xbf16> to vector<16x8xbf16>
      %c0_12 = arith.constant 0 : index
      %c8 = arith.constant 8 : index
      %23 = vector.load %arg12[%c0_12, %c8] : memref<16x32xbf16, #tpu.memory_space<vmem>>, vector<16x8xbf16>
      tpu.vector_store %arg12[%c0_12, %c8], %22 {strides = array<i32>} : memref<16x32xbf16, #tpu.memory_space<vmem>>, vector<16x8xbf16>,
      %24 = vector.extract_strided_slice %17 {offsets = [2, 0, 0], sizes = [1, 16, 8], strides = [1, 1, 1]} : vector<4x16x8xbf16> to vector<1x16x8xbf16>
      %25 = vector.shape_cast %24 : vector<1x16x8xbf16> to vector<16x8xbf16>
      %c0_13 = arith.constant 0 : index
      %c16 = arith.constant 16 : index
      %26 = vector.load %arg12[%c0_13, %c16] : memref<16x32xbf16, #tpu.memory_space<vmem>>, vector<16x8xbf16>
      tpu.vector_store %arg12[%c0_13, %c16], %25 {strides = array<i32>} : memref<16x32xbf16, #tpu.memory_space<vmem>>, vector<16x8xbf16>,
      %27 = vector.extract_strided_slice %17 {offsets = [3, 0, 0], sizes = [1, 16, 8], strides = [1, 1, 1]} : vector<4x16x8xbf16> to vector<1x16x8xbf16>
      %28 = vector.shape_cast %27 : vector<1x16x8xbf16> to vector<16x8xbf16>
      %c0_14 = arith.constant 0 : index
      %c24 = arith.constant 24 : index
      %29 = vector.load %arg12[%c0_14, %c24] : memref<16x32xbf16, #tpu.memory_space<vmem>>, vector<16x8xbf16>
      tpu.vector_store %arg12[%c0_14, %c24], %28 {strides = array<i32>} : memref<16x32xbf16, #tpu.memory_space<vmem>>, vector<16x8xbf16>,
      %c0_15 = arith.constant 0 : index
      %c0_16 = arith.constant 0 : index
      %30 = vector.load %arg12[%c0_15, %c0_16] : memref<16x32xbf16, #tpu.memory_space<vmem>>, vector<16x32xbf16>
      %c0_17 = arith.constant 0 : index
      %c0_18 = arith.constant 0 : index
      %31 = vector.load %arg6[%c0_17, %c0_18] : memref<32x32xbf16, #tpu.memory_space<vmem>>, vector<32x32xbf16>
      %cst = arith.constant dense<0.000000e+00> : vector<16x32xf32>
      %32 = tpu.matmul %30, %31, %cst {dimension_numbers = #tpu.dot_dimension_numbers<[1], [0], [0], [1], [0, 0, 1, 1], [], []>} : vector<16x32xbf16>, vector<32x32xbf16>, vector<16x32xf32> -> vector<16x32xf32>
      %c0_19 = arith.constant 0 : index
      %c0_20 = arith.constant 0 : index
      %33 = vector.load %arg7[%c0_19, %c0_20] : memref<1x32xf32, #tpu.memory_space<vmem>>, vector<1x32xf32>
      %34 = vector.broadcast %33 : vector<1x32xf32> to vector<16x32xf32>
      %35 = arith.addf %32, %34 : vector<16x32xf32>
      %c0_21 = arith.constant 0 : index
      %c0_22 = arith.constant 0 : index
      %c0_23 = arith.constant 0 : index
      %36 = vector.load %arg8[%c0_21, %c0_22, %c0_23] : memref<1x16x32xf32, #tpu.memory_space<vmem>>, vector<1x16x32xf32>
      %37 = vector.shape_cast %36 : vector<1x16x32xf32> to vector<16x32xf32>
      %38 = vector.shape_cast %35 : vector<16x32xf32> to vector<1x16x32xf32>
      tpu.vector_store %arg8[%c0_21, %c0_22, %c0_23], %38 {strides = array<i32>} : memref<1x16x32xf32, #tpu.memory_space<vmem>>, vector<1x16x32xf32>,
    } else {
    }
    return
  }
  func.func @transform_0(%arg0: i32, %arg1: i32, %arg2: i32) -> (i32, i32, i32, i32) {
    %c0_i32 = arith.constant 0 : i32
    %c0_i32_0 = arith.constant 0 : i32
    %c0_i32_1 = arith.constant 0 : i32
    return %arg0, %c0_i32, %arg1, %c0_i32_0 : i32, i32, i32, i32
  }
  func.func @transform_1(%arg0: i32, %arg1: i32, %arg2: i32) -> (i32, i32, i32, i32) {
    %c0_i32 = arith.constant 0 : i32
    %c0_i32_0 = arith.constant 0 : i32
    %c0_i32_1 = arith.constant 0 : i32
    return %arg0, %c0_i32, %arg2, %c0_i32_0 : i32, i32, i32, i32
  }
  func.func @transform_2(%arg0: i32, %arg1: i32, %arg2: i32) -> (i32, i32, i32, i32) {
    %c0_i32 = arith.constant 0 : i32
    %c0_i32_0 = arith.constant 0 : i32
    %c0_i32_1 = arith.constant 0 : i32
    return %arg0, %c0_i32, %arg2, %c0_i32_0 : i32, i32, i32, i32
  }
  func.func @transform_3(%arg0: i32, %arg1: i32, %arg2: i32) -> (i32, i32) {
    %c0_i32 = arith.constant 0 : i32
    %c0_i32_0 = arith.constant 0 : i32
    %c0_i32_1 = arith.constant 0 : i32
    return %c0_i32, %c0_i32_0 : i32, i32
  }
  func.func @transform_4(%arg0: i32, %arg1: i32, %arg2: i32) -> (i32, i32) {
    %c0_i32 = arith.constant 0 : i32
    %c0_i32_0 = arith.constant 0 : i32
    %c0_i32_1 = arith.constant 0 : i32
    return %c0_i32, %c0_i32_0 : i32, i32
  }
  func.func @transform_5(%arg0: i32, %arg1: i32, %arg2: i32) -> (i32, i32, i32) {
    %c0_i32 = arith.constant 0 : i32
    %c0_i32_0 = arith.constant 0 : i32
    return %arg0, %arg1, %c0_i32 : i32, i32, i32
  }
}

module attributes {stable_mosaic.version = 11 : i64} {
  func.func @qkv_proj_kernel(%arg0: i32, %arg1: i32, %arg2: memref<1x32x32xbf16, #tpu.memory_space<vmem>>, %arg3: memref<32x96xbf16, #tpu.memory_space<vmem>>, %arg4: memref<1x32x96xbf16, #tpu.memory_space<vmem>>) attributes {dimension_semantics = [#tpu.dimension_semantics<parallel>, #tpu.dimension_semantics<parallel>], iteration_bounds = array<i64: 2, 1>, scalar_prefetch = 0 : i64, scratch_operands = 0 : i64, tpu.core_type = #tpu.core_type<tc>, window_params = [{transform_indices = @transform_0, window_bounds = array<i64: 1, 32, 32>}, {pipeline_mode = #tpu.pipeline_mode<synchronous>, transform_indices = @transform_1, window_bounds = array<i64: 32, 96>}, {transform_indices = @transform_2, window_bounds = array<i64: 1, 32, 96>}]} {
    %c0 = arith.constant 0 : index
    %c0_0 = arith.constant 0 : index
    %c0_1 = arith.constant 0 : index
    %0 = vector.load %arg2[%c0, %c0_0, %c0_1] : memref<1x32x32xbf16, #tpu.memory_space<vmem>>, vector<1x32x32xbf16>
    %1 = vector.shape_cast %0 : vector<1x32x32xbf16> to vector<32x32xbf16>
    %c0_2 = arith.constant 0 : index
    %c0_3 = arith.constant 0 : index
    %2 = vector.load %arg3[%c0_2, %c0_3] : memref<32x96xbf16, #tpu.memory_space<vmem>>, vector<32x96xbf16>
    %cst = arith.constant dense<0.000000e+00> : vector<32x96xf32>
    %3 = tpu.matmul %1, %2, %cst {dimension_numbers = #tpu.dot_dimension_numbers<[1], [0], [0], [1], [0, 0, 1, 1], [], []>} : vector<32x32xbf16>, vector<32x96xbf16>, vector<32x96xf32> -> vector<32x96xf32>
    %4 = arith.truncf %3 : vector<32x96xf32> to vector<32x96xbf16>
    %c0_4 = arith.constant 0 : index
    %c0_5 = arith.constant 0 : index
    %c0_6 = arith.constant 0 : index
    %5 = vector.load %arg4[%c0_4, %c0_5, %c0_6] : memref<1x32x96xbf16, #tpu.memory_space<vmem>>, vector<1x32x96xbf16>
    %6 = vector.shape_cast %5 : vector<1x32x96xbf16> to vector<32x96xbf16>
    %7 = vector.shape_cast %4 : vector<32x96xbf16> to vector<1x32x96xbf16>
    tpu.vector_store %arg4[%c0_4, %c0_5, %c0_6], %7 {strides = array<i32>} : memref<1x32x96xbf16, #tpu.memory_space<vmem>>, vector<1x32x96xbf16>,
    return
  }
  func.func @transform_0(%arg0: i32, %arg1: i32) -> (i32, i32, i32) {
    %c0_i32 = arith.constant 0 : i32
    %c0_i32_0 = arith.constant 0 : i32
    return %arg0, %arg1, %c0_i32 : i32, i32, i32
  }
  func.func @transform_1(%arg0: i32, %arg1: i32) -> (i32, i32) {
    %c0_i32 = arith.constant 0 : i32
    %c0_i32_0 = arith.constant 0 : i32
    %c0_i32_1 = arith.constant 0 : i32
    return %c0_i32, %c0_i32_0 : i32, i32
  }
  func.func @transform_2(%arg0: i32, %arg1: i32) -> (i32, i32, i32) {
    %c0_i32 = arith.constant 0 : i32
    %c0_i32_0 = arith.constant 0 : i32
    return %arg0, %arg1, %c0_i32 : i32, i32, i32
  }
}

</mosaic_0001>

<bundles_post_ra>
// kernel: multi_head_attention.2
= control target key start
LH: loop header
LB: loop body
LE: loop exit
PB: predicated region body
PF: predicated region fallthrough
CT: control target
= control target key end

     0   :  { %s436_s9 = smov 0   ;;  %s438_s10 = smov 0   ;;  %s475_s0 = inlined_call_operand.vmem [shape: bf16[2,32,32], index: 0, kind: input, shape index: {}]   ;;  %s476_s1 = inlined_call_operand.vmem [shape: bf16[32,96], index: 1, kind: input, shape index: {}]   ;;  %s477_s2 = inlined_call_operand.vmem [shape: bf16[2,32,96], index: 2, kind: output, shape index: {}]  }
   0x1   :  { %s440_s11 = smov 0  }
   0x2 LB: > { %s24_s12 = sadd.s32 1, %s415_s10  ;;  %p340_p0 = scmp.ge.s32.totalorder %s419_s11, 1  ;;  %s419_s11 = sphi %s440_s11, %s12_s11   ;;  %s415_s10 = sphi %s438_s10, %s479_s10   ;;  %s411_s9 = sphi %s436_s9, %s478_s9  }
   0x3   : > { %p26_p1 = scmp.ge.s32.totalorder %s24_s12, 2  ;;  %p133_p2 = scmp.lt.s32.totalorder %s419_s11, 3 }
   0x5   : > { %s481_s12 = smov (%p26_p1, %s24_s12), 0  ;;  %p134_p3 = pnand %p340_p0, %p133_p2 }
   0x6   : > { %p164_p4 = scmp.lt.s32.totalorder (!%p134_p3), %s411_s9, 1 }
   0x7   : > { %137 = sbr.rel (%p134_p3) target bundleno = 158 (0x9e), region = 28 }
   0xc   : > { %v370_v0 = vld [vmem:[%s476_s1 + $0x8] sm:$0xff]  ;;  %v369_v1 = vld [vmem:[%s476_s1] sm:$0xff]  ;;  %s483_s9 = smov (!%p164_p4, %s411_s9), 1  ;;  %vm214_vm0 = vcmask 261120   ;;  %vm244_vm1 = vcmask 781312  }
   0xd   : > { %227 = vmatpush.bf16.msra.mxu0 %v370_v0  ;;  %371 = vmatpush.bf16.msra.mxu1 %v370_v0  ;;  %s365_s17 = sshll.u32 %s483_s9, 4 }
   0xe   : > { %s171_s20 = scalar_lea.vmem %s475_s0, %s365_s17  ;;  %s181_s23 = scalar_lea.vmem %s477_s2, %s365_s17 }
   0xf   : > { %v367_v2 = vld [vmem:[%s171_s20] sm:$0xff]  ;;  %v368_v3 = vld [vmem:[%s171_s20 + $0x8] sm:$0xff] }
  0x11   : > { %228 = vmatpush.bf16.msra.mxu0 %v369_v1  ;;  %372 = vmatpush.bf16.msra.mxu1 %v369_v1 }
  0x14   : > { %361 = vmatmul.msk.bf16.vlgmr.msra.gmra.mxu0 %vm214_vm0, %v367_v2  ;;  %362 = vmatmul.msk.bf16.vlgmr.msra.gmra.mxu1 %vm214_vm0, %v368_v3 }
  0x91   : > { %v230_v4 = vpop.f32.mrf.mxu0  ;;  %v235_v5 = vpop.f32.mrf.mxu1 }
  0x92   : > { %v240_v6 = vpack.c.bf16 %v230_v4, %v230_v4  ;;  %v242_v7 = vpack.c.bf16 %v235_v5, %v235_v5 }
  0x94   : > { %245 = vst.msk [vmem:[%s181_s23] sm:$0xf] %vm244_vm1, %v240_v6 }
  0x95   : > { %247 = vst.msk [vmem:[%s181_s23 + $0x8] sm:$0xf] %vm244_vm1, %v242_v7 }
  0x99   : > { %v232_v8 = vpop.f32.mrf.mxu0  ;;  %v237_v9 = vpop.f32.mrf.mxu1 }
  0x9a   : > { %v241_v10 = vpack.c.bf16 %v232_v8, %v232_v8  ;;  %v243_v11 = vpack.c.bf16 %v237_v9, %v237_v9 }
  0x9c   : > { %246 = vst.msk [vmem:[%s181_s23 + $0x4] sm:$0xf] %vm244_vm1, %v241_v10 }
  0x9d   : > { %248 = vst.msk [vmem:[%s181_s23 + $0xc] sm:$0xf] %vm244_vm1, %v243_v11 }
  0x9e PF: > { %s12_s11 = sadd.s32 1, %s419_s11   ;;  %s478_s9 = smov %s415_s10 }
  0x9f   : > { %p9_p5 = scmp.ge.s32.totalorder %s12_s11, 4   ;;  %s479_s10 = smov %s481_s12 }
  0xa1   :  { %11 = sbr.rel (!%p9_p5) target bundleno = 2 (0x2), region = 58 }

// kernel: multi_head_attention.3
= control target key start
LH: loop header
LB: loop body
LE: loop exit
PB: predicated region body
PF: predicated region fallthrough
CT: control target
= control target key end

     0   :  { %s2277_s0 = inlined_call_operand.vmem [shape: bf16[2,4,32,8], index: 0, kind: input, shape index: {}]   ;;  %s2278_s1 = inlined_call_operand.vmem [shape: bf16[2,4,32,8], index: 1, kind: input, shape index: {}]   ;;  %s2279_s2 = inlined_call_operand.vmem [shape: bf16[2,4,32,8], index: 2, kind: input, shape index: {}]   ;;  %s2280_s3 = inlined_call_operand.vmem [shape: bf16[32,32], index: 3, kind: input, shape index: {}]   ;;  %s2281_s4 = inlined_call_operand.vmem [shape: f32[1,32], index: 4, kind: input, shape index: {}]   ;;  %s2282_s5 = inlined_call_operand.hbm [shape: f32[2,32,32], index: 5, kind: output, shape index: {}]  }
   0x1   :  { %2289 = sst [smem:[#allocation17_spill]] %s2277_s0 }
   0x2   :  { %2290 = sst [smem:[#allocation18_spill]] %s2282_s5 }
   0x3   :  { %10 = vsyncpa [#allocation10], 0 }
   0x4   :  { %12 = vsyncpa [#allocation10 + $0x1], 0  ;;  %s1869_s18 = smov 0   ;;  %s1871_s19 = smov 0  }
   0x5   :  { %s1873_s20 = smov 0   ;;  %s1875_s21 = smov 0  }
   0x6   :  { %s1877_s22 = smov 0   ;;  %s1879_s23 = smov 0  }
   0x7   :  { %s1881_s24 = smov 0   ;;  %s1883_s25 = smov 0  }
   0x8   :  { %s1885_s26 = smov 0   ;;  %s1887_s27 = smov 0  }
   0x9   :  { %s1889_s28 = smov 0   ;;  %s1891_s29 = smov 0  }
   0xa LB: > { %2291 = sst [smem:[#allocation12_spill]] %s1783_s18  ;;  %s1417_s30 = sadd.s32 4294967295, %s1827_s29   ;;  %s1827_s29 = sphi %s1891_s29, %s18_s29   ;;  %s1823_s28 = sphi %s1889_s28, %s2317_s28   ;;  %s1819_s27 = sphi %s1887_s27, %s2316_s27   ;;  %s1815_s26 = sphi %s1885_s26, %s2315_s26   ;;  %s1811_s25 = sphi %s1883_s25, %s2314_s25   ;;  %s1807_s24 = sphi %s1881_s24, %s2313_s24   ;;  %s1803_s23 = sphi %s1879_s23, %s2312_s23   ;;  %s1799_s22 = sphi %s1877_s22, %s2311_s22   ;;  %s1795_s21 = sphi %s1875_s21, %s2310_s21   ;;  %s1791_s20 = sphi %s1873_s20, %s2309_s20   ;;  %s1787_s19 = sphi %s1871_s19, %s2308_s19   ;;  %s1783_s18 = sphi %s1869_s18, %s2307_s18  }
   0xb   : > { %s1418_s6 = sadd.s32 4294967294, %s1827_s29   ;;  %s30_s7 = sadd.s32 1, %s1815_s26 }
   0xc   : > { %p31_p0 = scmp.ge.s32.totalorder %s30_s7, 2  ;;  %s33_s8 = sadd.s32 1, %s1819_s27 }
   0xd   : > { %s37_s9 = sadd.s32 1, %s1823_s28  ;;  %p53_p1 = scmp.ne.s32.totalorder %s1799_s22, %s1795_s21 }
   0xe   : > { %s2319_s7 = smov (%p31_p0, %s30_s7), 0  ;;  %s2321_s8 = smov (!%p31_p0, %s33_s8), %s1819_s27 }
   0xf   : > { %2292 = sst [smem:[#allocation13_spill]] %s2319_s7  ;;  %s46_s10 = sadd.s32 1, %s1799_s22 }
  0x10   : > { %p54_p2 = scmp.eq.s32.totalorder %s1827_s29, 0  ;;  %p35_p3 = scmp.ge.s32.totalorder %s2321_s8, 2 }
  0x11   : > { %s70_s11 = ssub.s32 %s1815_s26, %s2319_s7  ;;  %p81_p5 = scmp.ne.s32.totalorder %s1791_s20, %s1787_s19 }
  0x12   : > { %p1946_p4 = por %p54_p2, %p53_p1  ;;  %s2323_s8 = smov (%p35_p3, %s2321_s8), 0 }
  0x13   : > { %2294 = sst [smem:[#allocation14_spill]] %s2323_s8  ;;  %s2325_s9 = smov (!%p35_p3, %s37_s9), %s1823_s28 }
  0x14   : > { %s42_s13 = ssub.s32 %s1819_s27, %s2323_s8  ;;  %p1957_p6 = por %p81_p5, %p54_p2 }
  0x15   : > { %p39_p7 = scmp.ge.s32.totalorder %s2325_s9, 2  ;;  %p183_p8 = scmp.eq.s32.totalorder %s1417_s30, 7 }
  0x16   : > { %p188_p9 = scmp.ne.s32.totalorder %s1795_s21, %s1783_s18  ;;  %p189_p10 = scmp.eq.s32.totalorder %s1418_s6, 7 }
  0x17   : > { %s2327_s9 = smov (%p39_p7, %s2325_s9), 0  ;;  %p1968_p11 = por %p183_p8, %p53_p1 }
  0x18   : > { %2296 = sst [smem:[#allocation15_spill]] %s2327_s9  ;;  %p1972_p12 = por %p189_p10, %p188_p9 }
  0x19   : > { %s41_s17 = ssub.s32 %s1823_s28, %s2327_s9  ;;  %s74_s8 = sadd.s32 1, %s1791_s20 }
  0x1a   : > { %s2298_s16 = scalar_select %p1972_p12, 1, 0 }
  0x1b   : > { %s43_s7 = sor.u32 %s42_s13, %s41_s17  ;;  %s71_s5 = sor.u32 %s70_s11, %s41_s17 }
  0x1c   : > { %2299 = sst [smem:[#allocation16_spill]] %s2298_s16  ;;  %p44_p13 = scmp.eq.s32.totalorder %s43_s7, 0 }
  0x1d   : > { %p72_p0 = scmp.eq.s32.totalorder %s71_s5, 0  ;;  %p1420_p2 = scmp.ge.s32.totalorder %s1827_s29, 8 }
  0x1e   : > { %s1980_s30 = scalar_select %p44_p13, %s1799_s22, %s46_s10  }
  0x1f   : > { %s1983_s6 = scalar_select %p72_p0, %s1791_s20, %s74_s8  }
  0x20   : > { %211 = sbr.rel (%p1420_p2) target bundleno = 73 (0x49), region = 24 }
  0x25   : > { %214 = sbr.rel (!%p1946_p4) target bundleno = 51 (0x33), region = 28  ;;  %s216_s16 = sand.u32 (%p1946_p4), 1, %s1799_s22  }
  0x26   : > { %s1422_s9 = sshll.u32 (%p1946_p4), %s1819_s27, 1  ;;  %s1421_s18 = sshll.u32 (%p1946_p4), %s216_s16, 5 }
  0x27   : > { %s1423_s13 = sshll.u32 (%p1946_p4), %s1823_s28, 4  ;;  %s2300_s0 = sld [smem:[#allocation17_spill]] (%p1946_p4) }
  0x28   : > { %s221_s11 = sadd.s32 (%p1946_p4), %s1423_s13, %s1422_s9  ;;  %s218_s17 = scalar_lea.vmem (%p1946_p4), [#allocation6], %s1421_s18 }
  0x29   : > { %s1424_s7 = sshll.u32 (%p1946_p4), %s221_s11, 2 }
  0x2d   : > { %s223_s8 = scalar_lea.vmem %s2300_s0, %s1424_s7 }
  0x2e   : > { %v240_v0 = vld [vmem:[%s223_s8] sm:$0xff]   ;;  %v244_v1 = vld [vmem:[%s223_s8 + $0x10] sm:$0xff]  }
  0x2f   : > { %v248_v2 = vld [vmem:[%s223_s8 + $0x20] sm:$0xff]   ;;  %241 = vst [vmem:[%s218_s17] sm:$0xff] %v240_v0   ;;  %v252_v3 = vld [vmem:[%s223_s8 + $0x30] sm:$0xff]  }
  0x30   : > { %245 = vst [vmem:[%s218_s17 + $0x8] sm:$0xff] %v244_v1  }
  0x31   : > { %249 = vst [vmem:[%s218_s17 + $0x10] sm:$0xff] %v248_v2  }
  0x32   : > { %253 = vst [vmem:[%s218_s17 + $0x18] sm:$0xff] %v252_v3  }
  0x33 PF: > { %295 = sbr.rel (!%p1957_p6) target bundleno = 62 (0x3e), region = 69  ;;  %s297_s9 = sand.u32 (%p1957_p6), 1, %s1791_s20  }
  0x34   : > { %s1426_s12 = sshll.u32 (%p1957_p6), %s1815_s26, 1  ;;  %s1425_s16 = sshll.u32 (%p1957_p6), %s297_s9, 5 }
  0x35   : > { %s1427_s13 = sshll.u32 (%p1957_p6), %s1823_s28, 4  ;;  %s299_s8 = scalar_lea.vmem (%p1957_p6), [#allocation7], %s1425_s16 }
  0x36   : > { %s302_s11 = sadd.s32 (%p1957_p6), %s1427_s13, %s1426_s12 }
  0x37   : > { %s1428_s7 = sshll.u32 (%p1957_p6), %s302_s11, 2 }
  0x38   : > { %s304_s10 = scalar_lea.vmem %s2278_s1, %s1428_s7 }
  0x39   : > { %v321_v4 = vld [vmem:[%s304_s10] sm:$0xff]   ;;  %v325_v5 = vld [vmem:[%s304_s10 + $0x10] sm:$0xff]  }
  0x3a   : > { %v329_v6 = vld [vmem:[%s304_s10 + $0x20] sm:$0xff]   ;;  %322 = vst [vmem:[%s299_s8] sm:$0xff] %v321_v4   ;;  %v333_v7 = vld [vmem:[%s304_s10 + $0x30] sm:$0xff]  }
  0x3b   : > { %326 = vst [vmem:[%s299_s8 + $0x8] sm:$0xff] %v325_v5  }
  0x3c   : > { %330 = vst [vmem:[%s299_s8 + $0x10] sm:$0xff] %v329_v6  }
  0x3d   : > { %334 = vst [vmem:[%s299_s8 + $0x18] sm:$0xff] %v333_v7  }
  0x3e PF: > { %376 = sbr.rel (!%p1957_p6) target bundleno = 73 (0x49), region = 110  ;;  %s378_s17 = sand.u32 (%p1957_p6), 1, %s1791_s20  }
  0x3f   : > { %s1430_s9 = sshll.u32 (%p1957_p6), %s1815_s26, 1  ;;  %s1429_s12 = sshll.u32 (%p1957_p6), %s378_s17, 5 }
  0x40   : > { %s1431_s13 = sshll.u32 (%p1957_p6), %s1823_s28, 4  ;;  %s380_s10 = scalar_lea.vmem (%p1957_p6), [#allocation8], %s1429_s12 }
  0x41   : > { %s383_s11 = sadd.s32 (%p1957_p6), %s1431_s13, %s1430_s9 }
  0x42   : > { %s1432_s7 = sshll.u32 (%p1957_p6), %s383_s11, 2 }
  0x43   : > { %s385_s18 = scalar_lea.vmem %s2279_s2, %s1432_s7 }
  0x44   : > { %v402_v8 = vld [vmem:[%s385_s18] sm:$0xff]   ;;  %v406_v9 = vld [vmem:[%s385_s18 + $0x10] sm:$0xff]  }
  0x45   : > { %v410_v10 = vld [vmem:[%s385_s18 + $0x20] sm:$0xff]   ;;  %403 = vst [vmem:[%s380_s10] sm:$0xff] %v402_v8   ;;  %v414_v11 = vld [vmem:[%s385_s18 + $0x30] sm:$0xff]  }
  0x46   : > { %407 = vst [vmem:[%s380_s10 + $0x8] sm:$0xff] %v406_v9  }
  0x47   : > { %411 = vst [vmem:[%s380_s10 + $0x10] sm:$0xff] %v410_v10  }
  0x48   : > { %415 = vst [vmem:[%s380_s10 + $0x18] sm:$0xff] %v414_v11  }
  0x49 PF: > { %p1433_p1 = scmp.ge.s32.totalorder %s1827_s29, 1  ;;  %p456_p3 = scmp.lt.s32.totalorder %s1827_s29, 9 }
  0x4b   : > { %p457_p4 = pnand %p1433_p1, %p456_p3 }
  0x4c   : > { %s2013_s14 = sand.u32 (!%p457_p4), 1, %s1795_s21   ;;  %s470_s8 = sand.u32 (!%p457_p4), 1, %s1787_s19  }
  0x4d   : > { %460 = sbr.rel (%p457_p4) target bundleno = 1104 (0x450), region = 151  ;;  %s1434_s17 = sshll.u32 (!%p457_p4), %s2013_s14, 5 }
  0x4e   : > { %s1435_s9 = sshll.u32 (!%p457_p4), %s470_s8, 5  ;;  %s1437_s12 = sshll.u32 (!%p457_p4), %s2013_s14, 4 }
  0x4f   : > { %s1438_s13 = sshll.u32 (!%p457_p4), %s1807_s24, 4  ;;  %s1439_s11 = sshll.u32 (!%p457_p4), %s1803_s23, 4 }
  0x50   : > { %s2020_s7 = scalar_lea.vmem (!%p457_p4), [#allocation6], %s1434_s17  ;;  %s2022_s5 = scalar_lea.vmem (!%p457_p4), [#allocation7], %s1435_s9 }
  0x51   : > { %s2024_s16 = scalar_lea.vmem (!%p457_p4), [#allocation8], %s1435_s9  ;;  %s2026_s18 = scalar_lea.vmem (!%p457_p4), [#allocation9], %s1437_s12 }
  0x52   : > { %p1440_p5 = scmp.ne.s32.totalorder %s1803_s23, 0 }
  0x54   : > { %522 = sbr.rel (%p1440_p5) target bundleno = 114 (0x72), region = 167 }
  0x59   : > { %vm523_vm0 = vcmask 7168   ;;  %v1829_v12 = vmov -1e+30   ;;  %v1830_v13 = vmov 0.0   ;;  %vm540_vm1 = vcmask 64512  }
  0x5a   : > { %524 = vst.msk [vmem:[#allocation2] sm:$0xff] %vm523_vm0, %v1829_v12 }
  0x5b   : > { %525 = vst.msk [vmem:[#allocation2 + $0x8] sm:$0xff] %vm523_vm0, %v1829_v12 }
  0x5c   : > { %526 = vst.msk [vmem:[#allocation2 + $0x10] sm:$0xff] %vm523_vm0, %v1829_v12 }
  0x5d   : > { %527 = vst.msk [vmem:[#allocation2 + $0x18] sm:$0xff] %vm523_vm0, %v1829_v12 }
  0x5e   : > { %528 = vst.msk [vmem:[#allocation2 + $0x20] sm:$0xff] %vm523_vm0, %v1829_v12 }
  0x5f   : > { %529 = vst.msk [vmem:[#allocation2 + $0x28] sm:$0xff] %vm523_vm0, %v1829_v12 }
  0x60   : > { %530 = vst.msk [vmem:[#allocation2 + $0x30] sm:$0xff] %vm523_vm0, %v1829_v12 }
  0x61   : > { %531 = vst.msk [vmem:[#allocation2 + $0x38] sm:$0xff] %vm523_vm0, %v1829_v12 }
  0x62   : > { %532 = vst.msk [vmem:[#allocation3] sm:$0xff] %vm523_vm0, %v1830_v13 }
  0x63   : > { %533 = vst.msk [vmem:[#allocation3 + $0x8] sm:$0xff] %vm523_vm0, %v1830_v13 }
  0x64   : > { %534 = vst.msk [vmem:[#allocation3 + $0x10] sm:$0xff] %vm523_vm0, %v1830_v13 }
  0x65   : > { %535 = vst.msk [vmem:[#allocation3 + $0x18] sm:$0xff] %vm523_vm0, %v1830_v13 }
  0x66   : > { %536 = vst.msk [vmem:[#allocation3 + $0x20] sm:$0xff] %vm523_vm0, %v1830_v13 }
  0x67   : > { %537 = vst.msk [vmem:[#allocation3 + $0x28] sm:$0xff] %vm523_vm0, %v1830_v13 }
  0x68   : > { %538 = vst.msk [vmem:[#allocation3 + $0x30] sm:$0xff] %vm523_vm0, %v1830_v13 }
  0x69   : > { %539 = vst.msk [vmem:[#allocation3 + $0x38] sm:$0xff] %vm523_vm0, %v1830_v13 }
  0x6a   : > { %541 = vst.msk [vmem:[#allocation4] sm:$0xff] %vm540_vm1, %v1830_v13 }
  0x6b   : > { %542 = vst.msk [vmem:[#allocation4 + $0x8] sm:$0xff] %vm540_vm1, %v1830_v13 }
  0x6c   : > { %543 = vst.msk [vmem:[#allocation4 + $0x10] sm:$0xff] %vm540_vm1, %v1830_v13 }
  0x6d   : > { %544 = vst.msk [vmem:[#allocation4 + $0x18] sm:$0xff] %vm540_vm1, %v1830_v13 }
  0x6e   : > { %545 = vst.msk [vmem:[#allocation4 + $0x20] sm:$0xff] %vm540_vm1, %v1830_v13 }
  0x6f   : > { %546 = vst.msk [vmem:[#allocation4 + $0x28] sm:$0xff] %vm540_vm1, %v1830_v13 }
  0x70   : > { %547 = vst.msk [vmem:[#allocation4 + $0x30] sm:$0xff] %vm540_vm1, %v1830_v13 }
  0x71   : > { %548 = vst.msk [vmem:[#allocation4 + $0x38] sm:$0xff] %vm540_vm1, %v1830_v13 }
  0x72 PF: > { %s549_s19 = sadd.s32 16, %s1438_s13 }
  0x73   : > { %p1441_p6 = scmp.ge.s32.totalorder %s1439_s11, %s549_s19 }
  0x75   : > { %553 = sbr.rel (%p1441_p6) target bundleno = 670 (0x29e), region = 171 }
  0x7a   : > { %v1522_v14 = vld [vmem:[%s2022_s5] sm:$0xff]  ;;  %vm602_vm2 = vcmask 64512   ;;  %v1523_v15 = vld [vmem:[%s2022_s5 + $0x8] sm:$0xff]  ;;  %v1524_v16 = vld [vmem:[%s2022_s5 + $0x10] sm:$0xff]  ;;  %v578_v26 = vlaneseq  ;;  %v581_v29 = vstv %s1438_s13  ;;  %v1831_v34 = vmov 0.0  }
  0x7b   : > { %v1525_v17 = vld [vmem:[%s2022_s5 + $0x18] sm:$0xff]  ;;  %v607_v18 = vsel %vm602_vm2, %v1522_v14, 0  ;;  %v637_v19 = vsel %vm602_vm2, %v1523_v15, 0  ;;  %v667_v20 = vsel %vm602_vm2, %v1524_v16, 0  ;;  %v1518_v22 = vld [vmem:[%s2020_s7] sm:$0xff]  ;;  %v1519_v23 = vld [vmem:[%s2020_s7 + $0x8] sm:$0xff]  ;;  %v586_v30 = vstv %s1439_s11 }
  0x7c   : > { %616 = vmatpush.bf16.xpose.msra.mxu0 %v607_v18  ;;  %646 = vmatpush.bf16.xpose.msra.mxu1 %v637_v19  ;;  %v697_v21 = vsel %vm602_vm2, %v1525_v17, 0  ;;  %v1520_v24 = vld [vmem:[%s2020_s7 + $0x10] sm:$0xff]  ;;  %v1521_v25 = vld [vmem:[%s2020_s7 + $0x18] sm:$0xff]  ;;  %v579_v27 = vshrl.u32 %v578_v26, 7  ;;  %v585_v28 = vand.u32 127, %v578_v26  ;;  %vm721_vm4 = vcmask 130048  }
  0x7d   : > { %676 = vmatpush.bf16.xpose.msra.mxu2 %v667_v20  ;;  %706 = vmatpush.bf16.xpose.msra.mxu3 %v697_v21  ;;  %v1832_v62 = vmov 0   ;;  %v715_v63 = vld [vmem:[#allocation2 + $0x10] sm:$0xff]  ;;  %v713_v0 = vld [vmem:[#allocation2] sm:$0xff]  ;;  %vm890_vm6 = vcmask 7168   ;;  %v714_v7 = vld [vmem:[#allocation2 + $0x8] sm:$0xff] }
  0x7e   : > { %v582_v31 = vadd.s32 %v581_v29, %v579_v27  ;;  %v587_v32 = vadd.s32 %v586_v30, %v585_v28  ;;  %v580_v33 = vadd.s32 8, %v579_v27  ;;  %1648 = vset.pattern.permute.xlu1 %v1832_v62  ;;  %1646 = vset.pattern.permute.xlu2 %v1832_v62  ;;  %v2103_v5 = vld [vmem:[#allocation2 + $0x30] sm:$0xff]  ;;  %v717_v6 = vld [vmem:[#allocation2 + $0x20] sm:$0xff]  ;;  %v716_v16 = vld [vmem:[#allocation2 + $0x18] sm:$0xff] }
  0x7f   : > { %1647 = vset.pattern.permute.xlu0 %v1832_v62  ;;  %v2115_v17 = vld [vmem:[#allocation2 + $0x28] sm:$0xff]  ;;  %v2126_v26 = vld [vmem:[#allocation2 + $0x38] sm:$0xff] }
  0x80   : > { %vm588_vm3 = vcmp.gt.s32.totalorder %v587_v32, %v582_v31  ;;  %v583_v36 = vadd.s32 %v581_v29, %v580_v33 }
  0x81   : > { %v590_v35 = vsel %vm588_vm3, -1e+30, %v1831_v34 }
  0x82   : > { %vm589_vm5 = vcmp.gt.s32.totalorder %v587_v32, %v583_v36 }
  0x83   : > { %1450 = vmatmul.msk.bf16.vlgmr.msra.gmra.mxu0 %vm602_vm2, %v1518_v22  ;;  %1459 = vmatmul.msk.bf16.vlgmr.msra.gmra.mxu1 %vm602_vm2, %v1519_v23  ;;  %v591_v43 = vsel %vm589_vm5, -1e+30, %v1831_v34 }
  0x84   : > { %1468 = vmatmul.msk.bf16.vlgmr.msra.gmra.mxu2 %vm602_vm2, %v1520_v24  ;;  %1477 = vmatmul.msk.bf16.vlgmr.msra.gmra.mxu3 %vm602_vm2, %v1521_v25 }
 0x100   : > { %v618_v37 = vpop.f32.mrf.mxu0  ;;  %v648_v38 = vpop.f32.mrf.mxu1 }
 0x101   : > { %v2069_v39 = vadd.f32 %v618_v37, %v590_v35  ;;  %v2071_v40 = vadd.f32 %v648_v38, %v590_v35 }
 0x103   : > { %v728_v41 = vsel %vm721_vm4, %v2071_v40, -inf  ;;  %v722_v42 = vsel %vm721_vm4, %v2069_v39, -inf }
 0x104   : > { %729 = vmax.xlane.f32.xlu0 %v728_v41  ;;  %723 = vmax.xlane.f32.xlu2 %v722_v42 }
 0x107   : > { %v678_v44 = vpop.f32.mrf.mxu2  ;;  %v708_v45 = vpop.f32.mrf.mxu3 }
 0x108   : > { %v2077_v46 = vadd.f32 %v678_v44, %v590_v35  ;;  %v2079_v47 = vadd.f32 %v708_v45, %v590_v35  ;;  %v620_v48 = vpop.f32.mrf.mxu0  ;;  %v650_v52 = vpop.f32.mrf.mxu1  ;;  %v1529_v44 = vld [vmem:[%s2024_s16 + $0x18] sm:$0xff] }
 0x109   : > { %v2081_v49 = vadd.f32 %v620_v48, %v591_v43  ;;  %v2089_v54 = vadd.f32 %v650_v52, %v591_v43  ;;  %1068 = vmatpush.bf16.msrb.mxu3 %v1529_v44  ;;  %v1526_v52 = vld [vmem:[%s2024_s16] sm:$0xff] }
 0x10a   : > { %v740_v50 = vsel %vm721_vm4, %v2079_v47, -inf  ;;  %v734_v51 = vsel %vm721_vm4, %v2077_v46, -inf  ;;  %984 = vmatpush.bf16.msrb.mxu0 %v1526_v52 }
 0x10b   : > { %741 = vmax.xlane.f32.xlu1 %v740_v50  ;;  %v725_v53 = vsel %vm721_vm4, %v2081_v49, -inf  ;;  %v731_v57 = vsel %vm721_vm4, %v2089_v54, -inf }
 0x10c   : > { %735 = vmax.xlane.f32.xlu0 %v734_v51  ;;  %726 = vmax.xlane.f32.xlu2 %v725_v53  ;;  %v1528_v53 = vld [vmem:[%s2024_s16 + $0x10] sm:$0xff] }
 0x10d   : > { %1040 = vmatpush.bf16.msrb.mxu2 %v1528_v53 }
 0x10f   : > { %v680_v55 = vpop.f32.mrf.mxu2  ;;  %v710_v58 = vpop.f32.mrf.mxu3 }
 0x110   : > { %v2091_v56 = vadd.f32 %v680_v55, %v591_v43  ;;  %v2097_v60 = vadd.f32 %v710_v58, %v591_v43 }
 0x112   : > { %v737_v59 = vsel %vm721_vm4, %v2091_v56, -inf  ;;  %v743_v61 = vsel %vm721_vm4, %v2097_v60, -inf }
 0x113   : > { %732 = vmax.xlane.f32.xlu1 %v731_v57 }
 0x114   : > { %738 = vmax.xlane.f32.xlu0 %v737_v59 }
 0x11b   : > { %744 = vmax.xlane.f32.xlu1 %v743_v61 }
 0x177   : > { %v730_v1 = vpop.xlane.xlu0 %729  ;;  %v724_v2 = vpop.xlane.xlu2 %723 }
 0x178   : > { %v748_v3 = vmax.f32 %v715_v63, %v730_v1  ;;  %v746_v4 = vmax.f32 %v713_v0, %v724_v2 }
 0x17a   : > { %1093 = vst.msk [vmem:[#allocation2 + $0x10] sm:$0xff] %vm890_vm6, %v748_v3  ;;  %v756_v15 = vsub.f32 %v715_v63, %v748_v3  ;;  %v754_v23 = vsub.f32 %v713_v0, %v746_v4  ;;  %v1527_v63 = vld [vmem:[%s2024_s16 + $0x8] sm:$0xff] }
 0x17b   : > { %1091 = vst.msk [vmem:[#allocation2] sm:$0xff] %vm890_vm6, %v746_v4  ;;  %1012 = vmatpush.bf16.msrb.mxu1 %v1527_v63 }
 0x17c   : > { %v766_v19 = vmul.f32 1.442695, %v756_v15  ;;  %v762_v27 = vmul.f32 1.442695, %v754_v23 }
 0x17e   : > { %v742_v8 = vpop.xlane.xlu1 %741  ;;  %1649 = vpow2.f32 %v766_v19 }
 0x17f   : > { %v2106_v9 = vmax.f32 %v2103_v5, %v742_v8  ;;  %v736_v10 = vpop.xlane.xlu0 %735  ;;  %v727_v11 = vpop.xlane.xlu2 %726  ;;  %1651 = vpow2.f32 %v762_v27 }
 0x180   : > { %v750_v12 = vmax.f32 %v717_v6, %v736_v10  ;;  %v747_v13 = vmax.f32 %v714_v7, %v727_v11 }
 0x181   : > { %v760_v14 = vsub.f32 %v2103_v5, %v2106_v9  ;;  %1097 = vst.msk [vmem:[#allocation2 + $0x30] sm:$0xff] %vm890_vm6, %v2106_v9  ;;  %810 = vperm.xlu1 %1648, %v2106_v9   ;;  %v846_v5 = vld [vmem:[#allocation3 + $0x20] sm:$0xff] }
 0x182   : > { %1095 = vst.msk [vmem:[#allocation2 + $0x20] sm:$0xff] %vm890_vm6, %v750_v12  ;;  %800 = vperm.xlu2 %1646, %v750_v12   ;;  %v758_v25 = vsub.f32 %v717_v6, %v750_v12  ;;  %v755_v34 = vsub.f32 %v714_v7, %v747_v13 }
 0x183   : > { %1092 = vst.msk [vmem:[#allocation2 + $0x8] sm:$0xff] %vm890_vm6, %v747_v13 }
 0x184   : > { %v770_v29 = vmul.f32 1.442695, %v758_v25  ;;  %v2131_v31 = vpop.eup %1649  ;;  %v764_v36 = vmul.f32 1.442695, %v755_v34 }
 0x185   : > { %v2139_v37 = vpop.eup %1651 }
 0x186   : > { %v733_v18 = vpop.xlane.xlu1 %732  ;;  %1653 = vpow2.f32 %v770_v29 }
 0x187   : > { %v749_v20 = vmax.f32 %v716_v16, %v733_v18  ;;  %v739_v21 = vpop.xlane.xlu0 %738 }
 0x188   : > { %v2118_v22 = vmax.f32 %v2115_v17, %v739_v21 }
 0x189   : > { %1094 = vst.msk [vmem:[#allocation2 + $0x18] sm:$0xff] %vm890_vm6, %v749_v20  ;;  %785 = vperm.xlu1 %1648, %v747_v13   ;;  %v757_v33 = vsub.f32 %v716_v16, %v749_v20 }
 0x18a   : > { %v759_v24 = vsub.f32 %v2115_v17, %v2118_v22  ;;  %1096 = vst.msk [vmem:[#allocation2 + $0x28] sm:$0xff] %vm890_vm6, %v2118_v22  ;;  %805 = vperm.xlu0 %1647, %v2118_v22   ;;  %780 = vperm.xlu2 %1646, %v746_v4  }
 0x18b   : > { %v768_v35 = vmul.f32 1.442695, %v757_v33 }
 0x18c   : > { %v2141_v38 = vpop.eup %1653 }
 0x18d   : > { %1655 = vpow2.f32 %v768_v35 }
 0x18e   : > { %v745_v28 = vpop.xlane.xlu1 %744  ;;  %1657 = vpow2.f32 %v764_v36 }
 0x18f   : > { %v2129_v30 = vmax.f32 %v2126_v26, %v745_v28 }
 0x191   : > { %v761_v32 = vsub.f32 %v2126_v26, %v2129_v30  ;;  %1098 = vst.msk [vmem:[#allocation2 + $0x38] sm:$0xff] %vm890_vm6, %v2129_v30  ;;  %795 = vperm.xlu1 %1648, %v749_v20  }
 0x192   : > { %919 = vperm.xlu0 %1647, %v2131_v31   ;;  %815 = vperm.xlu2 %1646, %v2129_v30   ;;  %v774_v30 = vmul.f32 1.442695, %v760_v14  ;;  %v854_v14 = vmul.f32 %v2141_v38, %v846_v5 }
 0x193   : > { %v2145_v41 = vpop.eup %1655 }
 0x194   : > { %v2147_v42 = vpop.eup %1657 }
 0x199   : > { %909 = vperm.xlu1 %1648, %v2139_v37  }
 0x19a   : > { %929 = vperm.xlu0 %1647, %v2141_v38   ;;  %790 = vperm.xlu2 %1646, %v748_v3   ;;  %v843_v38 = vld [vmem:[#allocation3 + $0x8] sm:$0xff] }
 0x1a1   : > { %924 = vperm.xlu1 %1648, %v2145_v41  }
 0x1a2   : > { %914 = vperm.xlu2 %1646, %v2147_v42  }
 0x1dc   : > { %v801_v43 = vpop.permute.xlu2 %800 }
 0x1dd   : > { %v822_v50 = vsub.f32 %v2077_v46, %v801_v43 }
 0x1df   : > { %v834_v55 = vmul.f32 1.442695, %v822_v50 }
 0x1e4   : > { %v781_v45 = vpop.permute.xlu2 %780 }
 0x1e5   : > { %v818_v48 = vsub.f32 %v2069_v39, %v781_v45 }
 0x1e7   : > { %v826_v51 = vmul.f32 1.442695, %v818_v48 }
 0x1e9   : > { %1659 = vpow2.f32 %v826_v51 }
 0x1ea   : > { %1661 = vpow2.f32 %v834_v55 }
 0x1ec   : > { %v816_v57 = vpop.permute.xlu2 %815 }
 0x1ed   : > { %v825_v58 = vsub.f32 %v2097_v60, %v816_v57 }
 0x1ef   : > { %v1660_v59 = vpop.eup %1659  ;;  %v840_v61 = vmul.f32 1.442695, %v825_v58 }
 0x1f0   : > { %v858_v62 = vsel %vm721_vm4, %v1660_v59, 0.0  ;;  %v1662_v1 = vpop.eup %1661  ;;  %v955_v27 = vpack.c.bf16 %v1660_v59, %v1660_v59 }
 0x1f1   : > { %859 = vadd.xlane.f32.xlu0 %v858_v62  ;;  %1663 = vpow2.f32 %v840_v61  ;;  %v870_v60 = vsel %vm721_vm4, %v1662_v1, 0.0  ;;  %v959_v29 = vpack.c.bf16 %v1662_v1, %v1662_v1 }
 0x1f2   : > { %v965_v45 = vunpack.c.l.b16 %v955_v27 }
 0x1f3   : > { %v811_v39 = vpop.permute.xlu1 %810  ;;  %v1021_v50 = vunpack.c.l.b16 %v959_v29 }
 0x1f4   : > { %v824_v46 = vsub.f32 %v2079_v47, %v811_v39  ;;  %v791_v0 = vpop.permute.xlu2 %790 }
 0x1f5   : > { %v820_v2 = vsub.f32 %v2071_v40, %v791_v0 }
 0x1f6   : > { %v838_v3 = vmul.f32 1.442695, %v824_v46 }
 0x1f7   : > { %v830_v4 = vmul.f32 1.442695, %v820_v2  ;;  %v1664_v6 = vpop.eup %1663  ;;  %v842_v2 = vld [vmem:[#allocation3] sm:$0xff] }
 0x1f8   : > { %1665 = vpow2.f32 %v838_v3  ;;  %v962_v11 = vpack.c.bf16 %v1664_v6, %v1664_v6  ;;  %v879_v19 = vsel %vm721_vm4, %v1664_v6, 0.0 }
 0x1f9   : > { %1667 = vpow2.f32 %v830_v4  ;;  %871 = vadd.xlane.f32.xlu0 %v870_v60  ;;  %v850_v4 = vmul.f32 %v2139_v37, %v842_v2 }
 0x1fa   : > { %v1050_v21 = vunpack.c.l.b16 %v962_v11 }
 0x1fb   : > { %v786_v7 = vpop.permute.xlu1 %785 }
 0x1fc   : > { %v819_v8 = vsub.f32 %v2081_v49, %v786_v7  ;;  %v806_v10 = vpop.permute.xlu0 %805  ;;  %v915_v9 = vpop.permute.xlu2 %914  ;;  %v848_v7 = vld [vmem:[#allocation3 + $0x30] sm:$0xff] }
 0x1fd   : > { %v823_v12 = vsub.f32 %v2091_v56, %v806_v10  ;;  %v844_v10 = vld [vmem:[#allocation3 + $0x10] sm:$0xff] }
 0x1fe   : > { %v1666_v47 = vpop.eup %1665  ;;  %v828_v13 = vmul.f32 1.442695, %v819_v8  ;;  %v849_v8 = vld [vmem:[#allocation3 + $0x38] sm:$0xff] }
 0x1ff   : > { %v1668_v15 = vpop.eup %1667  ;;  %v961_v16 = vpack.c.bf16 %v1666_v47, %v1666_v47  ;;  %v836_v40 = vmul.f32 1.442695, %v823_v12  ;;  %v876_v18 = vsel %vm721_vm4, %v1666_v47, 0.0  ;;  %v852_v47 = vmul.f32 %v2131_v31, %v844_v10 }
 0x200   : > { %1669 = vpow2.f32 %v828_v13  ;;  %877 = vadd.xlane.f32.xlu2 %v876_v18  ;;  %v864_v20 = vsel %vm721_vm4, %v1668_v15, 0.0  ;;  %v957_v55 = vpack.c.bf16 %v1668_v15, %v1668_v15 }
 0x201   : > { %v1049_v23 = vunpack.c.l.b16 %v961_v16  ;;  %1671 = vpow2.f32 %v836_v40  ;;  %880 = vadd.xlane.f32.xlu0 %v879_v19  ;;  %865 = vadd.xlane.f32.xlu1 %v864_v20  ;;  %v847_v19 = vld [vmem:[#allocation3 + $0x28] sm:$0xff]  ;;  %v851_v20 = vmul.f32 %v2147_v42, %v843_v38 }
 0x202   : > { %v993_v61 = vunpack.c.l.b16 %v957_v55 }
 0x203   : > { %v796_v49 = vpop.permute.xlu1 %795  ;;  %v1051_v56 = vpack.c.b16 %v1050_v21, %v1049_v23 }
 0x204   : > { %v821_v25 = vsub.f32 %v2089_v54, %v796_v49  ;;  %v776_v54 = vmul.f32 1.442695, %v761_v32  ;;  %v772_v32 = vmul.f32 1.442695, %v759_v24  ;;  %v920_v0 = vpop.permute.xlu0 %919 }
 0x205   : > { %1497 = vmatmul.msk.bf16.vlgmr.msrb.gmra.mxu3 %vm721_vm4, %v1051_v56 }
 0x206   : > { %v1670_v28 = vpop.eup %1669  ;;  %v832_v33 = vmul.f32 1.442695, %v821_v25  ;;  %v845_v25 = vld [vmem:[#allocation3 + $0x18] sm:$0xff] }
 0x207   : > { %v1672_v34 = vpop.eup %1671  ;;  %v956_v35 = vpack.c.bf16 %v1670_v28, %v1670_v28  ;;  %v861_v36 = vsel %vm721_vm4, %v1670_v28, 0.0  ;;  %v853_v27 = vmul.f32 %v2145_v41, %v845_v25 }
 0x208   : > { %v960_v43 = vpack.c.bf16 %v1672_v34, %v1672_v34  ;;  %1673 = vpow2.f32 %v832_v33  ;;  %862 = vadd.xlane.f32.xlu2 %v861_v36  ;;  %v873_v44 = vsel %vm721_vm4, %v1672_v34, 0.0  ;;  %v899_v33 = vld [vmem:[#allocation4] sm:$0xff] }
 0x209   : > { %v966_v48 = vunpack.c.l.b16 %v956_v35  ;;  %874 = vadd.xlane.f32.xlu1 %v873_v44  ;;  %1675 = vpow2.f32 %v776_v54  ;;  %v901_v54 = vld [vmem:[#allocation4 + $0x10] sm:$0xff] }
 0x20a   : > { %v1022_v51 = vunpack.c.l.b16 %v960_v43  ;;  %1677 = vpow2.f32 %v774_v30  ;;  %v906_v43 = vld [vmem:[#allocation4 + $0x38] sm:$0xff] }
 0x20b   : > { %v967_v52 = vpack.c.b16 %v966_v48, %v965_v45  ;;  %1679 = vpow2.f32 %v772_v32  ;;  %v910_v3 = vpop.permute.xlu1 %909  ;;  %v903_v45 = vld [vmem:[#allocation4 + $0x20] sm:$0xff]  ;;  %v900_v48 = vld [vmem:[#allocation4 + $0x8] sm:$0xff] }
 0x20c   : > { %v1023_v53 = vpack.c.b16 %v1022_v51, %v1021_v50  ;;  %v930_v1 = vpop.permute.xlu0 %929  ;;  %v947_v35 = vmul.f32 %v910_v3, %v899_v33  ;;  %v948_v41 = vmul.f32 %v915_v9, %v900_v48  ;;  %v904_v32 = vld [vmem:[#allocation4 + $0x28] sm:$0xff] }
 0x20d   : > { %1482 = vmatmul.msk.bf16.vlgmr.msrb.gmra.mxu0 %vm721_vm4, %v967_v52  ;;  %v951_v51 = vmul.f32 %v930_v1, %v903_v45  ;;  %v902_v1 = vld [vmem:[#allocation4 + $0x18] sm:$0xff] }
 0x20e   : > { %v1674_v57 = vpop.eup %1673  ;;  %1492 = vmatmul.msk.bf16.vlgmr.msrb.gmra.mxu2 %vm721_vm4, %v1023_v53  ;;  %v949_v53 = vmul.f32 %v920_v0, %v901_v54 }
 0x20f   : > { %v958_v58 = vpack.c.bf16 %v1674_v57, %v1674_v57  ;;  %v867_v59 = vsel %vm721_vm4, %v1674_v57, 0.0  ;;  %v1676_v26 = vpop.eup %1675 }
 0x210   : > { %868 = vadd.xlane.f32.xlu2 %v867_v59  ;;  %v1678_v39 = vpop.eup %1677  ;;  %v857_v37 = vmul.f32 %v1676_v26, %v849_v8 }
 0x211   : > { %v994_v62 = vunpack.c.l.b16 %v958_v58  ;;  %v1680_v46 = vpop.eup %1679  ;;  %v856_v11 = vmul.f32 %v1678_v39, %v848_v7 }
 0x212   : > { %v855_v23 = vmul.f32 %v1680_v46, %v847_v19 }
 0x213   : > { %v995_v63 = vpack.c.b16 %v994_v62, %v993_v61  ;;  %v2187_v17 = vpop.permute.xlu1 %924  ;;  %v905_v62 = vld [vmem:[#allocation4 + $0x30] sm:$0xff] }
 0x214   : > { %v950_v3 = vmul.f32 %v2187_v17, %v902_v1 }
 0x215   : > { %1487 = vmatmul.msk.bf16.vlgmr.msrb.gmra.mxu1 %vm721_vm4, %v995_v63  ;;  %944 = vperm.xlu0 %1647, %v1676_v26  }
 0x222   : > { %939 = vperm.xlu1 %1648, %v1678_v39  }
 0x228   : > { %934 = vperm.xlu2 %1646, %v1680_v46  }
 0x264   : > { %v860_v60 = vpop.xlane.xlu0 %859 }
 0x265   : > { %v882_v6 = vadd.f32 %v860_v60, %v850_v4 }
 0x267   : > { %891 = vst.msk [vmem:[#allocation3] sm:$0xff] %vm890_vm6, %v882_v6 }
 0x26c   : > { %v872_v22 = vpop.xlane.xlu0 %871 }
 0x26d   : > { %v886_v24 = vadd.f32 %v872_v22, %v854_v14 }
 0x26f   : > { %895 = vst.msk [vmem:[#allocation3 + $0x20] sm:$0xff] %vm890_vm6, %v886_v24 }
 0x273   : > { %v878_v12 = vpop.xlane.xlu2 %877 }
 0x274   : > { %v888_v13 = vadd.f32 %v878_v12, %v856_v11  ;;  %v881_v15 = vpop.xlane.xlu0 %880  ;;  %v866_v16 = vpop.xlane.xlu1 %865 }
 0x275   : > { %v889_v40 = vadd.f32 %v881_v15, %v857_v37  ;;  %v884_v18 = vadd.f32 %v866_v16, %v852_v47 }
 0x276   : > { %897 = vst.msk [vmem:[#allocation3 + $0x30] sm:$0xff] %vm890_vm6, %v888_v13 }
 0x277   : > { %898 = vst.msk [vmem:[#allocation3 + $0x38] sm:$0xff] %vm890_vm6, %v889_v40 }
 0x278   : > { %893 = vst.msk [vmem:[#allocation3 + $0x10] sm:$0xff] %vm890_vm6, %v884_v18 }
 0x27b   : > { %v863_v21 = vpop.xlane.xlu2 %862 }
 0x27c   : > { %v883_v49 = vadd.f32 %v863_v21, %v851_v20  ;;  %v875_v56 = vpop.xlane.xlu1 %874 }
 0x27d   : > { %v887_v31 = vadd.f32 %v875_v56, %v855_v23 }
 0x27e   : > { %892 = vst.msk [vmem:[#allocation3 + $0x8] sm:$0xff] %vm890_vm6, %v883_v49 }
 0x27f   : > { %896 = vst.msk [vmem:[#allocation3 + $0x28] sm:$0xff] %vm890_vm6, %v887_v31 }
 0x283   : > { %v869_v28 = vpop.xlane.xlu2 %868 }
 0x284   : > { %v885_v29 = vadd.f32 %v869_v28, %v853_v27 }
 0x286   : > { %894 = vst.msk [vmem:[#allocation3 + $0x18] sm:$0xff] %vm890_vm6, %v885_v29 }
 0x287   : > { %v945_v44 = vpop.permute.xlu0 %944 }
 0x288   : > { %v1070_v34 = vpop.f32.mrf.mxu3  ;;  %v954_v50 = vmul.f32 %v945_v44, %v906_v43 }
 0x28a   : > { %v986_v42 = vpop.f32.mrf.mxu0 }
 0x28b   : > { %v1075_v36 = vadd.f32 %v986_v42, %v947_v35  ;;  %v935_v39 = vpop.permute.xlu2 %934 }
 0x28c   : > { %v952_v2 = vmul.f32 %v935_v39, %v904_v32 }
 0x28d   : > { %1083 = vst.msk [vmem:[#allocation4] sm:$0xff] %vm602_vm2, %v1075_v36 }
 0x290   : > { %v1072_v52 = vpop.f32.mrf.mxu3 }
 0x291   : > { %v1082_v55 = vadd.f32 %v1072_v52, %v954_v50  ;;  %v1042_v57 = vpop.f32.mrf.mxu2 }
 0x292   : > { %v988_v58 = vpop.f32.mrf.mxu0  ;;  %v1014_v59 = vpop.f32.mrf.mxu1  ;;  %v1079_v61 = vadd.f32 %v1042_v57, %v951_v51 }
 0x293   : > { %1090 = vst.msk [vmem:[#allocation4 + $0x38] sm:$0xff] %vm602_vm2, %v1082_v55  ;;  %v1076_v63 = vadd.f32 %v988_v58, %v948_v41  ;;  %v1077_v26 = vadd.f32 %v1014_v59, %v949_v53 }
 0x294   : > { %1087 = vst.msk [vmem:[#allocation4 + $0x20] sm:$0xff] %vm602_vm2, %v1079_v61  ;;  %v940_v30 = vpop.permute.xlu1 %939 }
 0x295   : > { %1084 = vst.msk [vmem:[#allocation4 + $0x8] sm:$0xff] %vm602_vm2, %v1076_v63  ;;  %v953_v46 = vmul.f32 %v940_v30, %v905_v62 }
 0x296   : > { %1085 = vst.msk [vmem:[#allocation4 + $0x10] sm:$0xff] %vm602_vm2, %v1077_v26 }
 0x297   : > { %v1081_v0 = vadd.f32 %v1070_v34, %v953_v46 }
 0x299   : > { %1089 = vst.msk [vmem:[#allocation4 + $0x30] sm:$0xff] %vm602_vm2, %v1081_v0  ;;  %v1044_v4 = vpop.f32.mrf.mxu2 }
 0x29a   : > { %v1016_v60 = vpop.f32.mrf.mxu1  ;;  %v1080_v6 = vadd.f32 %v1044_v4, %v952_v2 }
 0x29b   : > { %v1078_v5 = vadd.f32 %v1016_v60, %v950_v3 }
 0x29c   : > { %1088 = vst.msk [vmem:[#allocation4 + $0x28] sm:$0xff] %vm602_vm2, %v1080_v6 }
 0x29d   : > { %1086 = vst.msk [vmem:[#allocation4 + $0x18] sm:$0xff] %vm602_vm2, %v1078_v5 }
 0x29e PF: > { %p1498_p7 = scmp.ne.s32.totalorder %s1803_s23, 1 }
 0x29f   : > { %s1834_s23 = smov (!%p1498_p7), 16   ;;  %s1835_s10 = smov (!%p1498_p7), 8  }
 0x2a0   : > { %1102 = sbr.rel (%p1498_p7) target bundleno = 1081 (0x439), region = 175  ;;  %s1836_s8 = smov (!%p1498_p7), 24  }
 0x2a5   : > { %v1107_v9 = vld [vmem:[#allocation3 + $0x20] sm:$0xff]  ;;  %v1105_v14 = vld [vmem:[#allocation3 + $0x10] sm:$0xff]  ;;  %v1833_v22 = vmov 0   ;;  %v1108_v17 = vld [vmem:[#allocation3 + $0x28] sm:$0xff]  ;;  %vm1183_vm7 = vcmask 60416   ;;  %vm1194_vm8 = vcmask 126016  }
 0x2a6   : > { %1682 = vset.pattern.permute.xlu1 %v1833_v22  ;;  %1681 = vset.pattern.permute.xlu0 %v1833_v22  ;;  %1685 = vrcp.f32 %v1107_v9  ;;  %v1109_v24 = vld [vmem:[#allocation3 + $0x30] sm:$0xff]  ;;  %v1106_v7 = vld [vmem:[#allocation3 + $0x18] sm:$0xff]  ;;  %v1104_v37 = vld [vmem:[#allocation3 + $0x8] sm:$0xff]  ;;  %vm1205_vm9 = vcmask 191616   ;;  %vm1216_vm10 = vcmask 257216   ;;  %vm1246_vm11 = vcmask 261120  }
 0x2a7   : > { %1687 = vrcp.f32 %v1105_v14  ;;  %1683 = vset.pattern.permute.xlu2 %v1833_v22  ;;  %v1110_v11 = vld [vmem:[#allocation3 + $0x38] sm:$0xff]  ;;  %v1103_v13 = vld [vmem:[#allocation3] sm:$0xff]  ;;  %v1121_v20 = vld [vmem:[#allocation4 + $0x10] sm:$0xff] }
 0x2a8   : > { %1689 = vrcp.f32 %v1108_v17  ;;  %v1123_v19 = vld [vmem:[#allocation4 + $0x20] sm:$0xff]  ;;  %v1126_v31 = vld [vmem:[#allocation4 + $0x38] sm:$0xff]  ;;  %v1124_v33 = vld [vmem:[#allocation4 + $0x28] sm:$0xff] }
 0x2a9   : > { %1691 = vrcp.f32 %v1109_v24  ;;  %v1122_v34 = vld [vmem:[#allocation4 + $0x18] sm:$0xff]  ;;  %v1125_v54 = vld [vmem:[#allocation4 + $0x30] sm:$0xff]  ;;  %v1120_v50 = vld [vmem:[#allocation4 + $0x8] sm:$0xff] }
 0x2aa   : > { %1693 = vrcp.f32 %v1106_v7  ;;  %v1119_v51 = vld [vmem:[#allocation4] sm:$0xff]  ;;  %v1532_v63 = vld [vmem:[%s2280_s3 + $0x8] sm:$0xff] }
 0x2ab   : > { %1695 = vrcp.f32 %v1110_v11  ;;  %1256 = vmatpush.bf16.msra.mxu0 %v1532_v63  ;;  %v1531_v26 = vld [vmem:[%s2280_s3] sm:$0xff] }
 0x2ac   : > { %v1686_v8 = vpop.eup %1685  ;;  %1697 = vrcp.f32 %v1104_v37  ;;  %v1684_v2 = vld [vmem:[%s2281_s4] ss:$0 sm:$0xff] }
 0x2ad   : > { %v1688_v10 = vpop.eup %1687  ;;  %1149 = vperm.xlu1 %1682, %v1686_v8   ;;  %1699 = vrcp.f32 %v1103_v13 }
 0x2ae   : > { %1139 = vperm.xlu0 %1681, %v1688_v10   ;;  %v1690_v12 = vpop.eup %1689 }
 0x2af   : > { %v1692_v47 = vpop.eup %1691  ;;  %1257 = vmatpush.bf16.msra.mxu0 %v1531_v26 }
 0x2b0   : > { %v1694_v15 = vpop.eup %1693  ;;  %1159 = vperm.xlu2 %1683, %v1692_v47  }
 0x2b1   : > { %v1696_v16 = vpop.eup %1695 }
 0x2b2   : > { %v1698_v40 = vpop.eup %1697 }
 0x2b3   : > { %v1700_v18 = vpop.eup %1699 }
 0x2b5   : > { %1154 = vperm.xlu1 %1682, %v1690_v12  }
 0x2b6   : > { %1144 = vperm.xlu0 %1681, %v1694_v15  }
 0x2b8   : > { %1164 = vperm.xlu2 %1683, %v1696_v16  }
 0x2bd   : > { %1134 = vperm.xlu1 %1682, %v1698_v40  }
 0x2be   : > { %1129 = vperm.xlu0 %1681, %v1700_v18  }
 0x30a   : > { %v1160_v38 = vpop.permute.xlu2 %1159 }
 0x30b   : > { %v1173_v52 = vmul.f32 %v1160_v38, %v1125_v54 }
 0x30d   : > { %v1181_v59 = vpack.c.bf16 %v1173_v52, %v1173_v52 }
 0x312   : > { %v1165_v25 = vpop.permute.xlu2 %1164 }
 0x313   : > { %v1174_v29 = vmul.f32 %v1165_v25, %v1126_v31 }
 0x315   : > { %v1182_v42 = vpack.c.bf16 %v1174_v29, %v1174_v29 }
 0x31f   : > { %v1150_v21 = vpop.permute.xlu1 %1149 }
 0x320   : > { %v1171_v23 = vmul.f32 %v1150_v21, %v1123_v19  ;;  %v1140_v49 = vpop.permute.xlu0 %1139 }
 0x321   : > { %v1169_v56 = vmul.f32 %v1140_v49, %v1121_v20 }
 0x322   : > { %v1179_v27 = vpack.c.bf16 %v1171_v23, %v1171_v23 }
 0x323   : > { %v1177_v28 = vpack.c.bf16 %v1169_v56, %v1169_v56 }
 0x324   : > { %1199 = vrot.lane.b32.xlu1 %v1179_v27, %s1834_s23 }
 0x325   : > { %1188 = vrot.lane.b32.xlu2 %v1177_v28, %s1835_s10 }
 0x327   : > { %v1155_v35 = vpop.permute.xlu1 %1154 }
 0x328   : > { %v1172_v36 = vmul.f32 %v1155_v35, %v1124_v33  ;;  %v1145_v43 = vpop.permute.xlu0 %1144 }
 0x329   : > { %v1170_v44 = vmul.f32 %v1145_v43, %v1122_v34 }
 0x32a   : > { %v1180_v45 = vpack.c.bf16 %v1172_v36, %v1172_v36 }
 0x32b   : > { %v1178_v48 = vpack.c.bf16 %v1170_v44, %v1170_v44 }
 0x32c   : > { %1212 = vrot.lane.b32.xlu1 %v1182_v42, %s1836_s8 }
 0x32d   : > { %1201 = vrot.lane.b32.xlu2 %v1180_v45, %s1834_s23  ;;  %1190 = vrot.lane.b32.xlu0 %v1178_v48, %s1835_s10 }
 0x32f   : > { %v1135_v41 = vpop.permute.xlu1 %1134 }
 0x330   : > { %v1168_v53 = vmul.f32 %v1135_v41, %v1120_v50  ;;  %v1130_v55 = vpop.permute.xlu0 %1129 }
 0x331   : > { %v1167_v57 = vmul.f32 %v1130_v55, %v1119_v51 }
 0x332   : > { %v1176_v58 = vpack.c.bf16 %v1168_v53, %v1168_v53 }
 0x333   : > { %v1175_v61 = vpack.c.bf16 %v1167_v57, %v1167_v57 }
 0x334   : > { %1185 = vst.msk [vmem:[#allocation5 + $0x4] sm:$0xf] %vm1183_vm7, %v1176_v58 }
 0x335   : > { %1184 = vst.msk [vmem:[#allocation5] sm:$0xf] %vm1183_vm7, %v1175_v61  ;;  %1210 = vrot.lane.b32.xlu0 %v1181_v59, %s1836_s8 }
 0x37f   : > { %v1189_v62 = vpop.permute.xlu2 %1188 }
 0x380   : > { %1195 = vst.msk [vmem:[#allocation5] sm:$0xf] %vm1194_vm8, %v1189_v62 }
 0x387   : > { %v1202_v39 = vpop.permute.xlu2 %1201 }
 0x396   : > { %v1200_v30 = vpop.permute.xlu1 %1199 }
 0x397   : > { %1206 = vst.msk [vmem:[#allocation5] sm:$0xf] %vm1205_vm9, %v1200_v30 }
 0x39e   : > { %v1213_v46 = vpop.permute.xlu1 %1212 }
 0x39f   : > { %v1191_v32 = vpop.permute.xlu0 %1190 }
 0x3a0   : > { %1196 = vst.msk [vmem:[#allocation5 + $0x4] sm:$0xf] %vm1194_vm8, %v1191_v32 }
 0x3a1   : > { %1207 = vst.msk [vmem:[#allocation5 + $0x4] sm:$0xf] %vm1205_vm9, %v1202_v39 }
 0x3a2   : > { %1218 = vst.msk [vmem:[#allocation5 + $0x4] sm:$0xf] %vm1216_vm10, %v1213_v46 }
 0x3a7   : > { %v1211_v1 = vpop.permute.xlu0 %1210 }
 0x3a8   : > { %1217 = vst.msk [vmem:[#allocation5] sm:$0xf] %vm1216_vm10, %v1211_v1 }
 0x3af   : > { %v1530_v0 = vld [vmem:[#allocation5] sm:$0xff] }
 0x3b0   : > { %1511 = vmatmul.msk.bf16.vlgmr.msra.gmra.mxu0 %vm1246_vm11, %v1530_v0 }
 0x42d   : > { %v1259_v3 = vpop.f32.mrf.mxu0 }
 0x42e   : > { %v1260_v4 = vadd.f32 %v1684_v2, %v1259_v3 }
 0x430   : > { %1264 = vst.msk [vmem:[%s2026_s18] sm:$0xff] %vm1246_vm11, %v1260_v4 }
 0x435   : > { %v1261_v60 = vpop.f32.mrf.mxu0 }
 0x436   : > { %v1262_v6 = vadd.f32 %v1684_v2, %v1261_v60 }
 0x438   : > { %1265 = vst.msk [vmem:[%s2026_s18 + $0x8] sm:$0xff] %vm1246_vm11, %v1262_v6 }
 0x439 PF: > { %s1513_s5 = sshll.u32 %s1807_s24, 1  ;;  %s1514_s16 = sshll.u32 %s1811_s25, 2 }
 0x43a   : > { %s1281_s19 = sshll.u32 %s2026_s18, 4  ;;  %s1278_s23 = sadd.s32 %s1514_s16, %s1513_s5  ;;  %s1282_s19 = int_to_ptr.vmem [resolvable:$true] %s1281_s19 }
 0x43b   : > { %s1515_s10 = sshll.u32 %s1278_s23, 3  ;;  %s2301_s9 = sld [smem:[#allocation18_spill]] }
 0x43c   : > { %s1267_s11 = scalar_lea.sflag [#allocation10], %s2013_s14 }
 0x441   : > { %s1280_s12 = scalar_lea.hbm %s2301_s9, %s1515_s10  ;;  %s1721_s18 = scalar_lea.hbm %s2301_s9, 64 }
 0x442   : > { %s1283_s13 = sshll.u32 %s1280_s12, 4  ;;  %s1284_s13 = int_to_ptr.hbm [resolvable:$true] %s1283_s13 }
 0x443   : > { %s1715_s7 = sshra.s32 %s1284_s13, 4  ;;  %s1716_s7 = int_to_ptr.hbm [resolvable:$true] %s1715_s7 }
 0x444   : > { %s1717_s0 = scalar_lea.hbm %s1716_s7, 16  ;;  %p1722_p13 = scmp.lt.s32.totalorder %s1716_s7, %s2301_s9 }
 0x445   : > { %p1718_p8 = scmp.ne.s32.totalorder %s1716_s7, %s1717_s0  ;;  %p1723_p0 = scmp.lt.s32.totalorder %s1721_s18, %s1717_s0 }
 0x447   : > { %p1719_p9 = pnand %p1718_p8, %p1968_p11  ;;  %p1724_p2 = por %p1723_p0, %p1722_p13 }
 0x449   : > { %p1720_p10 = pneg %p1719_p9 }
 0x44b   : > { %p1725_p1 = pnand %p1724_p2, %p1720_p10 }
 0x44d   : > { %1728 = shalt.err (!%p1725_p1)
}
 0x44e   : > { %s1837_s14 = smov 128   ;;  %s1838_s23 = smov 8  }
 0x44f   : > { %1533 = dma.vmem_to_hbm [thread:$0]  (%p1968_p11), %s1282_s19, 256, %s1284_s13, %s1267_s11, %s1837_s14, %s1837_s14, %s1838_s23  }
 0x450 PF: > { %s2302_s10 = sld [smem:[#allocation12_spill]]  ;;  %p1539_p3 = scmp.ge.s32.totalorder %s1827_s29, 2 }
 0x452   : > { %p1536_p4 = pnand %p1539_p3, %p1972_p12 }
 0x454   : > { %p1537_p5 = pneg %p1536_p4 }
 0x456   : > { %s1298_s17 = sand.u32 1, %s2302_s10  }
 0x457   : > { %s1299_s12 = scalar_lea.sflag [#allocation10], %s1298_s17 }
 0x458   : > { %1778 = dma.done.wait (%p1537_p5), %s1299_s12, 256  }
 0x459   : > { %1780 = vsyncadd (%p1537_p5), %s1299_s12, 4294967040  ;;  %s18_s29 = sadd.s32 1, %s1827_s29   ;;  %s2304_s0 = sld [smem:[#allocation13_spill]] }
 0x45a   : > { %p15_p6 = scmp.ge.s32.totalorder %s18_s29, 10   ;;  %s2305_s15 = sld [smem:[#allocation14_spill]] }
 0x45b   : > { %s2306_s13 = sld [smem:[#allocation15_spill]]  ;;  %s2307_s18 = smov %s1795_s21 }
 0x45c   : > { %s2308_s19 = smov %s1791_s20  ;;  %s2309_s20 = smov %s1983_s6 }
 0x45d   : > { %s2310_s21 = smov %s1799_s22  ;;  %s2311_s22 = smov %s1980_s30 }
 0x45e   : > { %s2312_s23 = smov %s1815_s26  ;;  %s2313_s24 = smov %s1819_s27 }
 0x45f   : > { %s2314_s25 = smov %s1823_s28  ;;  %s2315_s26 = smov %s2304_s0 }
 0x460   : > { %s2316_s27 = smov %s2305_s15  ;;  %17 = sbr.rel (!%p15_p6) target bundleno = 10 (0xa), region = 231 }
 0x461   : > { %s2317_s28 = smov %s2306_s13 }
 0x465   :  { %1305 = vsyncpa [#allocation10], 1 }
 0x466   :  { %1307 = vsyncpa [#allocation10 + $0x1], 1 }

</bundles_post_ra>
